<compile_context>
chip_gen: v6e
topology: v6e:2x2x1
jax: 0.10.0
libtpu: 0.0.40
codegen_flags: <defaults>
</compile_context>

<pallas_src>
import functools

import jax
import jax.numpy as jnp
from jax.experimental import pallas as pl
from jax.experimental.pallas import tpu as pltpu


# ----------------------------------------------------------------------------
# Single fused kernel
#   pooled_ref : [2B, 512] f32   avg-pooled features, rows [0:B) real,
#                                rows [B:2B) cycle-fake
#   tgt2_ref   : [2B, Gpad] f32  target glyph vector, repeated for both passes
#   w_ref      : [1280, 256] bf16 packed weight slab (w1|w2|w3|w4)
#   vecs_ref   : [8, 256] f32    packed rows: b1, b2, gamma, beta, b3, b4, 0, 0
#   feat_a/b   : lane-dense f32 slabs of real_embed / cycle_fake_embed
#   fimg/timg/dmap : lane-dense f32 slabs of fake_img / target_img / dist map
#   embed_ref  : [2B, Gpad] f32  sigmoid head output, both passes
#   scal_ref   : [1, 4] f32 SMEM [bce_real, bce_fake, const_base, weighted_l1]
# ----------------------------------------------------------------------------
def _fused_z2z_kernel(pooled_ref, tgt2_ref, w_ref, vecs_ref,
                      feat_a_ref, feat_b_ref, fimg_ref, timg_ref, dmap_ref,
                      embed_ref, scal_ref, *, batch, glyph_num):
    B = batch
    two_b = 2 * B
    g_pad = embed_ref.shape[1]

    # packed per-layer vectors (single [8,256] DMA; static row views)
    b1    = vecs_ref[0:1, :]
    b2    = vecs_ref[1:2, :]
    gamma = vecs_ref[2:3, :]
    beta  = vecs_ref[3:4, :]
    b3    = vecs_ref[4:5, :]
    b4    = vecs_ref[5:6, 0:g_pad]

    # ---- glyph head: both passes in one M=2B chain (1x1 convs == matmuls) ----
    x = pooled_ref[...].astype(jnp.bfloat16)                        # [2B, 512]
    h = jnp.dot(x, w_ref[0:512, :],
                preferred_element_type=jnp.float32) + b1
    h = jnp.dot(h.astype(jnp.bfloat16), w_ref[512:768, :],
                preferred_element_type=jnp.float32) + b2

    # LeakyReLU (PyTorch default negative_slope = 0.01)
    h = jnp.where(h > 0, h, 0.01 * h)

    # BatchNorm2d(256) training mode, per-pass biased batch stats.
    # Row masks instead of reshape/slice keep everything VPU-friendly.
    row = jax.lax.broadcasted_iota(jnp.int32, (two_b, 1), 0)
    is_real = (row < B).astype(jnp.float32)                         # [2B, 1]
    is_fake = 1.0 - is_real
    inv_b = 1.0 / B
    mu_r = jnp.sum(h * is_real, axis=0, keepdims=True) * inv_b
    mu_f = jnp.sum(h * is_fake, axis=0, keepdims=True) * inv_b
    mu = is_real * mu_r + is_fake * mu_f
    d = h - mu
    var_r = jnp.sum(d * d * is_real, axis=0, keepdims=True) * inv_b
    var_f = jnp.sum(d * d * is_fake, axis=0, keepdims=True) * inv_b
    var = is_real * var_r + is_fake * var_f
    h = d * jax.lax.rsqrt(var + 1e-5) * gamma + beta

    h = jnp.dot(h.astype(jnp.bfloat16), w_ref[768:1024, :],
                preferred_element_type=jnp.float32) + b3
    z = jnp.dot(h.astype(jnp.bfloat16), w_ref[1024:1280, 0:g_pad],
                preferred_element_type=jnp.float32) + b4            # [2B, Gpad]

    embed_ref[...] = jax.nn.sigmoid(z)

    # ---- BCE from logits via stable log-sigmoid (clamp -100 == nn.BCELoss) --
    # NOTE: log(1+exp(-|z|)) vs log1p only differs for |z| > ~16 where the term
    # is < 1e-7 and irrelevant after the clamp; plain log stays on the
    # known-good Mosaic exp/log path.
    t2 = tgt2_ref[...]
    sp = jnp.log(1.0 + jnp.exp(-jnp.abs(z)))
    log_p  = jnp.maximum(jnp.minimum(z, 0.0) - sp, -100.0)
    log_1p = jnp.maximum(jnp.minimum(-z, 0.0) - sp, -100.0)
    col = jax.lax.broadcasted_iota(jnp.int32, (1, g_pad), 1)
    col_mask = (col < glyph_num).astype(jnp.float32)                # pad guard
    elem = -(t2 * log_p + (1.0 - t2) * log_1p) * col_mask
    denom = 1.0 / (B * glyph_num)
    scal_ref[0, 0] = jnp.sum(elem * is_real) * denom                # BCE real
    scal_ref[0, 1] = jnp.sum(elem * is_fake) * denom                # BCE fake

    # ---- const-loss base: mean(|real_embed - cycle_fake_embed|) -------------
    scal_ref[0, 2] = jnp.mean(jnp.abs(feat_a_ref[...] - feat_b_ref[...]))

    # ---- distance-weighted image L1 -----------------------------------------
    scal_ref[0, 3] = jnp.mean(dmap_ref[...]
                              * jnp.abs(fimg_ref[...] - timg_ref[...]))


def _lane_dense_2d(x):
    """Flatten to a lane-dense (N/128, 128) slab (falls back to (1, N))."""
    n = x.size
    if n % 128 == 0:
        return x.reshape(n // 128, 128)
    # TODO(synk): pad to a multiple of 128 and mask if such shapes ever appear.
    return x.reshape(1, n)


# ----------------------------------------------------------------------------
# Forward wrapper (the generator-side losses this subclass adds / overrides)
# ----------------------------------------------------------------------------
def _z2z_glyph_distance_losses(real_embed, cycle_fake_embed, fake_img,
                               target_img, distance_map, target_glyph,
                               glyph_params, loss_w):
    B, C, H, W = real_embed.shape
    assert C == 512 and cycle_fake_embed.shape == real_embed.shape
    w_slab, vecs = glyph_params
    G = target_glyph.shape[1]
    Gpad = ((G + 127) // 128) * 128
    assert Gpad <= 256

    # adaptive_avg_pool2d(., 1) == mean over H, W (cheap XLA reduce; see TODO
    # at top about in-kernel fusion).  Rows [0:B)=real, [B:2B)=cycle-fake.
    pooled = jnp.concatenate([jnp.mean(real_embed, axis=(2, 3)),
                              jnp.mean(cycle_fake_embed, axis=(2, 3))],
                             axis=0)                                # [2B, 512]

    tg = target_glyph.astype(jnp.float32)
    if Gpad != G:
        tg = jnp.pad(tg, ((0, 0), (0, Gpad - G)))
    tg2 = jnp.concatenate([tg, tg], axis=0)                         # [2B, Gpad]

    vmem = pl.BlockSpec(memory_space=pltpu.MemorySpace.VMEM)
    smem = pl.BlockSpec(memory_space=pltpu.MemorySpace.SMEM)

    embeds, scal = pl.pallas_call(
        functools.partial(_fused_z2z_kernel, batch=B, glyph_num=G),
        out_shape=[jax.ShapeDtypeStruct((2 * B, Gpad), jnp.float32),
                   jax.ShapeDtypeStruct((1, 4), jnp.float32)],
        in_specs=[vmem] * 9,
        out_specs=[vmem, smem],
    )(pooled, tg2, w_slab, vecs,
      _lane_dense_2d(real_embed), _lane_dense_2d(cycle_fake_embed),
      _lane_dense_2d(fake_img), _lane_dense_2d(target_img),
      _lane_dense_2d(distance_map))

    glyph_embed = embeds[:B, :G]                    # head output on real_embed
    glyph_loss = loss_w['glyph'] * (2.0 * scal[0, 0] + scal[0, 1])
    # const loss: chn=512 != out_channels -> plain mean, then squared
    const_loss = loss_w['Constant'] * jnp.square(scal[0, 2])
    # image L1: chn == out_channels -> distance_map weighting
    l1_loss = loss_w['L1'] * scal[0, 3]
    return glyph_loss, const_loss, l1_loss, glyph_embed


z2z_glyph_distance_losses = jax.jit(_z2z_glyph_distance_losses)


# ----------------------------------------------------------------------------
# Parameter init (deterministic, synthetic — shapes from __init__)
# ----------------------------------------------------------------------------
def init_glyph_params(key, glyph_embedding_num):
    assert glyph_embedding_num <= 256
    G = glyph_embedding_num
    ks = jax.random.split(key, 10)

    def wmat(k, cin, cout):
        # nn.Conv2d(cin, cout, 1).weight is [cout, cin, 1, 1]; stored as a
        # [cin, cout] matmul weight.
        return 0.05 * jax.random.normal(k, (cin, cout), jnp.float32)

    def vec(k, n):
        return 0.05 * jax.random.normal(k, (n,), jnp.float32)

    w1 = wmat(ks[0], 512, 256)
    w2 = wmat(ks[1], 256, 256)
    w3 = wmat(ks[2], 256, 256)
    w4 = jnp.zeros((256, 256), jnp.float32).at[:, :G].set(wmat(ks[3], 256, G))
    # Single packed [1280, 256] bf16 weight slab (1 DMA, native MXU dtype):
    # rows [0:512)=w1, [512:768)=w2, [768:1024)=w3, [1024:1280)=w4 (col-padded).
    w_slab = jnp.concatenate([w1, w2, w3, w4], axis=0).astype(jnp.bfloat16)

    b1, b2, b3 = vec(ks[4], 256), vec(ks[5], 256), vec(ks[6], 256)
    gamma = 1.0 + 0.05 * jax.random.normal(ks[7], (256,), jnp.float32)
    beta = vec(ks[8], 256)
    b4 = jnp.zeros((256,), jnp.float32).at[:G].set(vec(ks[9], G))
    # Pack all per-layer vectors into one (8, 256) array -> single DMA.
    vecs = jnp.stack([b1, b2, gamma, beta, b3, b4,
                      jnp.zeros((256,), jnp.float32),
                      jnp.zeros((256,), jnp.float32)], axis=0)
    return (w_slab, vecs)


# ----------------------------------------------------------------------------
# Pure-JAX references (same bf16-matmul precision as the kernel)
# ----------------------------------------------------------------------------
def glyph_head_ref(feat_nchw, params, G):
    w_slab, vecs = params
    w1 = w_slab[0:512, :]
    w2 = w_slab[512:768, :]
    w3 = w_slab[768:1024, :]
    w4 = w_slab[1024:1280, :G]
    b1, b2, gamma, beta, b3 = (vecs[i:i + 1, :] for i in range(5))
    b4 = vecs[5:6, :G]
    pooled = jnp.mean(feat_nchw, axis=(2, 3))
    mm = lambda a, b: jnp.dot(a.astype(jnp.bfloat16), b,
                              preferred_element_type=jnp.float32)
    h = mm(pooled, w1) + b1
    h = mm(h, w2) + b2
    h = jnp.where(h > 0, h, 0.01 * h)
    mu = jnp.mean(h, axis=0, keepdims=True)
    var = jnp.mean((h - mu) ** 2, axis=0, keepdims=True)
    h = (h - mu) / jnp.sqrt(var + 1e-5) * gamma + beta
    h = mm(h, w3) + b3
    z = mm(h, w4) + b4
    return jax.nn.sigmoid(z)


def bce_ref(p, t):
    log_p = jnp.maximum(jnp.log(p), -100.0)
    log_1p = jnp.maximum(jnp.log(1.0 - p), -100.0)
    return jnp.mean(-(t * log_p + (1.0 - t) * log_1p))


if __name__ == "__main__":
    key = jax.random.PRNGKey(0)
    k_feat, k_cyc, k_img, k_tgt, k_dm, k_gl, k_par = jax.random.split(key, 7)

    B = 2
    G = 128            # opts.glyph_embedding_num
    out_channels = 1   # opts.out_channels (image channels)

    # Synthetic encoder bottleneck features [B, 512, 8, 8] (NCHW).
    real_embed = jax.random.normal(k_feat, (B, 512, 8, 8), jnp.float32)
    cycle_fake_embed = jax.random.normal(k_cyc, (B, 512, 8, 8), jnp.float32)

    # Synthetic images / distance map [B, 1, 16, 16].
    fake_img = jax.nn.sigmoid(jax.random.normal(k_img, (B, out_channels, 16, 16),
                                                jnp.float32))
    target_img = jax.nn.sigmoid(jax.random.normal(k_tgt, (B, out_channels, 16, 16),
                                                  jnp.float32))
    distance_map = jax.random.uniform(k_dm, (B, out_channels, 16, 16),
                                      jnp.float32, 0.5, 2.0)

    # Binary glyph one-hot-ish target vector [B, G].
    target_glyph = (jax.random.uniform(k_gl, (B, G)) > 0.9).astype(jnp.float32)

    glyph_params = init_glyph_params(k_par, G)
    loss_w = {'L1': 100.0, 'Constant': 15.0, 'Category': 1.0,
              'Cheat': 1.0, 'glyph': 10.0}

    glyph_loss, const_loss, l1_loss, glyph_embed = jax.block_until_ready(
        z2z_glyph_distance_losses(real_embed, cycle_fake_embed, fake_img,
                                  target_img, distance_map, target_glyph,
                                  glyph_params, loss_w))

    # sanity checks against pure-JAX references
    ge_real_ref = glyph_head_ref(real_embed, glyph_params, G)
    ge_fake_ref = glyph_head_ref(cycle_fake_embed, glyph_params, G)
    assert jnp.allclose(glyph_embed, ge_real_ref, rtol=5e-3, atol=5e-4), \
        "glyph head mismatch"

    glyph_loss_ref = loss_w['glyph'] * (2.0 * bce_ref(ge_real_ref, target_glyph)
                                        + bce_ref(ge_fake_ref, target_glyph))
    assert jnp.allclose(glyph_loss, glyph_loss_ref, rtol=5e-3, atol=1e-3), \
        "glyph BCE loss mismatch"

    l1_ref = loss_w['L1'] * jnp.mean(distance_map * jnp.abs(fake_img - target_img))
    assert jnp.allclose(l1_loss, l1_ref, rtol=2e-3, atol=1e-5), "L1 loss mismatch"

    const_ref = loss_w['Constant'] * jnp.square(
        jnp.mean(jnp.abs(real_embed - cycle_fake_embed)))
    assert jnp.allclose(const_loss, const_ref, rtol=2e-3, atol=1e-5), \
        "const loss mismatch"

    print("KERNEL_OK")
</pallas_src>

<mosaic_0001>
module attributes {stable_mosaic.version = 11 : i64} {
  func.func @_fused_z2z_kernel(%arg0: memref<4x512xf32, #tpu.memory_space<vmem>>, %arg1: memref<4x128xf32, #tpu.memory_space<vmem>>, %arg2: memref<1280x256xbf16, #tpu.memory_space<vmem>>, %arg3: memref<8x256xf32, #tpu.memory_space<vmem>>, %arg4: memref<512x128xf32, #tpu.memory_space<vmem>>, %arg5: memref<512x128xf32, #tpu.memory_space<vmem>>, %arg6: memref<4x128xf32, #tpu.memory_space<vmem>>, %arg7: memref<4x128xf32, #tpu.memory_space<vmem>>, %arg8: memref<4x128xf32, #tpu.memory_space<vmem>>, %arg9: memref<4x128xf32, #tpu.memory_space<vmem>>, %arg10: memref<1x4xf32, #tpu.memory_space<smem>>) attributes {dimension_semantics = [], scalar_prefetch = 0 : i64, scratch_operands = 0 : i64, tpu.core_type = #tpu.core_type<tc>} {
    %c0 = arith.constant 0 : index
    %c0_0 = arith.constant 0 : index
    %0 = vector.load %arg3[%c0, %c0_0] : memref<8x256xf32, #tpu.memory_space<vmem>>, vector<1x256xf32>
    %c1 = arith.constant 1 : index
    %c0_1 = arith.constant 0 : index
    %1 = vector.load %arg3[%c1, %c0_1] : memref<8x256xf32, #tpu.memory_space<vmem>>, vector<1x256xf32>
    %c2 = arith.constant 2 : index
    %c0_2 = arith.constant 0 : index
    %2 = vector.load %arg3[%c2, %c0_2] : memref<8x256xf32, #tpu.memory_space<vmem>>, vector<1x256xf32>
    %c3 = arith.constant 3 : index
    %c0_3 = arith.constant 0 : index
    %3 = vector.load %arg3[%c3, %c0_3] : memref<8x256xf32, #tpu.memory_space<vmem>>, vector<1x256xf32>
    %c4 = arith.constant 4 : index
    %c0_4 = arith.constant 0 : index
    %4 = vector.load %arg3[%c4, %c0_4] : memref<8x256xf32, #tpu.memory_space<vmem>>, vector<1x256xf32>
    %c5 = arith.constant 5 : index
    %c0_5 = arith.constant 0 : index
    %5 = vector.load %arg3[%c5, %c0_5] : memref<8x256xf32, #tpu.memory_space<vmem>>, vector<1x128xf32>
    %c0_6 = arith.constant 0 : index
    %c0_7 = arith.constant 0 : index
    %6 = vector.load %arg0[%c0_6, %c0_7] : memref<4x512xf32, #tpu.memory_space<vmem>>, vector<4x512xf32>
    %7 = arith.truncf %6 : vector<4x512xf32> to vector<4x512xbf16>
    %c0_8 = arith.constant 0 : index
    %c0_9 = arith.constant 0 : index
    %8 = vector.load %arg2[%c0_8, %c0_9] : memref<1280x256xbf16, #tpu.memory_space<vmem>>, vector<512x256xbf16>
    %cst = arith.constant dense<0.000000e+00> : vector<4x256xf32>
    %9 = tpu.matmul %7, %8, %cst {dimension_numbers = #tpu.dot_dimension_numbers<[1], [0], [0], [1], [0, 0, 1, 1], [], []>} : vector<4x512xbf16>, vector<512x256xbf16>, vector<4x256xf32> -> vector<4x256xf32>
    %10 = vector.broadcast %0 : vector<1x256xf32> to vector<4x256xf32>
    %11 = arith.addf %9, %10 : vector<4x256xf32>
    %12 = arith.truncf %11 : vector<4x256xf32> to vector<4x256xbf16>
    %c512 = arith.constant 512 : index
    %c0_10 = arith.constant 0 : index
    %13 = vector.load %arg2[%c512, %c0_10] : memref<1280x256xbf16, #tpu.memory_space<vmem>>, vector<256x256xbf16>
    %cst_11 = arith.constant dense<0.000000e+00> : vector<4x256xf32>
    %14 = tpu.matmul %12, %13, %cst_11 {dimension_numbers = #tpu.dot_dimension_numbers<[1], [0], [0], [1], [0, 0, 1, 1], [], []>} : vector<4x256xbf16>, vector<256x256xbf16>, vector<4x256xf32> -> vector<4x256xf32>
    %15 = vector.broadcast %1 : vector<1x256xf32> to vector<4x256xf32>
    %16 = arith.addf %14, %15 : vector<4x256xf32>
    %cst_12 = arith.constant 0.000000e+00 : f32
    %17 = vector.broadcast %cst_12 : f32 to vector<4x256xf32>
    %18 = arith.cmpf ogt, %16, %17 : vector<4x256xf32>
    %cst_13 = arith.constant 0.00999999977 : f32
    %19 = vector.broadcast %cst_13 : f32 to vector<4x256xf32>
    %20 = arith.mulf %19, %16 : vector<4x256xf32>
    %21 = arith.select %18, %16, %20 : vector<4x256xi1>, vector<4x256xf32>
    %22 = tpu.iota {dimensions = array<i32: 0>} : vector<4x1xi32>
    %c2_i32 = arith.constant 2 : i32
    %23 = vector.broadcast %c2_i32 : i32 to vector<4x1xi32>
    %24 = arith.cmpi slt, %22, %23 : vector<4x1xi32>
    %25 = arith.extui %24 : vector<4x1xi1> to vector<4x1xi32>
    %26 = arith.sitofp %25 : vector<4x1xi32> to vector<4x1xf32>
    %cst_14 = arith.constant 1.000000e+00 : f32
    %27 = vector.broadcast %cst_14 : f32 to vector<4x1xf32>
    %28 = arith.subf %27, %26 : vector<4x1xf32>
    %29 = vector.broadcast %26 : vector<4x1xf32> to vector<4x256xf32>
    %30 = arith.mulf %21, %29 : vector<4x256xf32>
    %cst_15 = arith.constant dense<0.000000e+00> : vector<256xf32>
    %31 = vector.multi_reduction <add>, %30, %cst_15 [0] : vector<4x256xf32> to vector<256xf32>
    %32 = vector.shape_cast %31 : vector<256xf32> to vector<1x256xf32>
    %cst_16 = arith.constant 5.000000e-01 : f32
    %33 = vector.broadcast %cst_16 : f32 to vector<1x256xf32>
    %34 = arith.mulf %32, %33 : vector<1x256xf32>
    %35 = vector.broadcast %28 : vector<4x1xf32> to vector<4x256xf32>
    %36 = arith.mulf %21, %35 : vector<4x256xf32>
    %cst_17 = arith.constant dense<0.000000e+00> : vector<256xf32>
    %37 = vector.multi_reduction <add>, %36, %cst_17 [0] : vector<4x256xf32> to vector<256xf32>
    %38 = vector.shape_cast %37 : vector<256xf32> to vector<1x256xf32>
    %cst_18 = arith.constant 5.000000e-01 : f32
    %39 = vector.broadcast %cst_18 : f32 to vector<1x256xf32>
    %40 = arith.mulf %38, %39 : vector<1x256xf32>
    %41 = vector.broadcast %26 : vector<4x1xf32> to vector<4x256xf32>
    %42 = vector.broadcast %34 : vector<1x256xf32> to vector<4x256xf32>
    %43 = arith.mulf %41, %42 : vector<4x256xf32>
    %44 = vector.broadcast %28 : vector<4x1xf32> to vector<4x256xf32>
    %45 = vector.broadcast %40 : vector<1x256xf32> to vector<4x256xf32>
    %46 = arith.mulf %44, %45 : vector<4x256xf32>
    %47 = arith.addf %43, %46 : vector<4x256xf32>
    %48 = arith.subf %21, %47 : vector<4x256xf32>
    %49 = arith.mulf %48, %48 : vector<4x256xf32>
    %50 = vector.broadcast %26 : vector<4x1xf32> to vector<4x256xf32>
    %51 = arith.mulf %49, %50 : vector<4x256xf32>
    %cst_19 = arith.constant dense<0.000000e+00> : vector<256xf32>
    %52 = vector.multi_reduction <add>, %51, %cst_19 [0] : vector<4x256xf32> to vector<256xf32>
    %53 = vector.shape_cast %52 : vector<256xf32> to vector<1x256xf32>
    %cst_20 = arith.constant 5.000000e-01 : f32
    %54 = vector.broadcast %cst_20 : f32 to vector<1x256xf32>
    %55 = arith.mulf %53, %54 : vector<1x256xf32>
    %56 = arith.mulf %48, %48 : vector<4x256xf32>
    %57 = vector.broadcast %28 : vector<4x1xf32> to vector<4x256xf32>
    %58 = arith.mulf %56, %57 : vector<4x256xf32>
    %cst_21 = arith.constant dense<0.000000e+00> : vector<256xf32>
    %59 = vector.multi_reduction <add>, %58, %cst_21 [0] : vector<4x256xf32> to vector<256xf32>
    %60 = vector.shape_cast %59 : vector<256xf32> to vector<1x256xf32>
    %cst_22 = arith.constant 5.000000e-01 : f32
    %61 = vector.broadcast %cst_22 : f32 to vector<1x256xf32>
    %62 = arith.mulf %60, %61 : vector<1x256xf32>
    %63 = vector.broadcast %26 : vector<4x1xf32> to vector<4x256xf32>
    %64 = vector.broadcast %55 : vector<1x256xf32> to vector<4x256xf32>
    %65 = arith.mulf %63, %64 : vector<4x256xf32>
    %66 = vector.broadcast %28 : vector<4x1xf32> to vector<4x256xf32>
    %67 = vector.broadcast %62 : vector<1x256xf32> to vector<4x256xf32>
    %68 = arith.mulf %66, %67 : vector<4x256xf32>
    %69 = arith.addf %65, %68 : vector<4x256xf32>
    %cst_23 = arith.constant 9.99999974E-6 : f32
    %70 = vector.broadcast %cst_23 : f32 to vector<4x256xf32>
    %71 = arith.addf %69, %70 : vector<4x256xf32>
    %72 = math.rsqrt %71 : vector<4x256xf32>
    %73 = arith.mulf %48, %72 : vector<4x256xf32>
    %74 = vector.broadcast %2 : vector<1x256xf32> to vector<4x256xf32>
    %75 = arith.mulf %73, %74 : vector<4x256xf32>
    %76 = vector.broadcast %3 : vector<1x256xf32> to vector<4x256xf32>
    %77 = arith.addf %75, %76 : vector<4x256xf32>
    %78 = arith.truncf %77 : vector<4x256xf32> to vector<4x256xbf16>
    %c768 = arith.constant 768 : index
    %c0_24 = arith.constant 0 : index
    %79 = vector.load %arg2[%c768, %c0_24] : memref<1280x256xbf16, #tpu.memory_space<vmem>>, vector<256x256xbf16>
    %cst_25 = arith.constant dense<0.000000e+00> : vector<4x256xf32>
    %80 = tpu.matmul %78, %79, %cst_25 {dimension_numbers = #tpu.dot_dimension_numbers<[1], [0], [0], [1], [0, 0, 1, 1], [], []>} : vector<4x256xbf16>, vector<256x256xbf16>, vector<4x256xf32> -> vector<4x256xf32>
    %81 = vector.broadcast %4 : vector<1x256xf32> to vector<4x256xf32>
    %82 = arith.addf %80, %81 : vector<4x256xf32>
    %83 = arith.truncf %82 : vector<4x256xf32> to vector<4x256xbf16>
    %c1024 = arith.constant 1024 : index
    %c0_26 = arith.constant 0 : index
    %84 = vector.load %arg2[%c1024, %c0_26] : memref<1280x256xbf16, #tpu.memory_space<vmem>>, vector<256x128xbf16>
    %cst_27 = arith.constant dense<0.000000e+00> : vector<4x128xf32>
    %85 = tpu.matmul %83, %84, %cst_27 {dimension_numbers = #tpu.dot_dimension_numbers<[1], [0], [0], [1], [0, 0, 1, 1], [], []>} : vector<4x256xbf16>, vector<256x128xbf16>, vector<4x128xf32> -> vector<4x128xf32>
    %86 = vector.broadcast %5 : vector<1x128xf32> to vector<4x128xf32>
    %87 = arith.addf %85, %86 : vector<4x128xf32>
    %88 = arith.negf %87 : vector<4x128xf32>
    %89 = math.exp %88 : vector<4x128xf32>
    %cst_28 = arith.constant 1.000000e+00 : f32
    %90 = vector.broadcast %cst_28 : f32 to vector<4x128xf32>
    %91 = arith.addf %90, %89 : vector<4x128xf32>
    %92 = arith.divf %90, %91 : vector<4x128xf32>
    %c0_29 = arith.constant 0 : index
    %c0_30 = arith.constant 0 : index
    %93 = vector.load %arg9[%c0_29, %c0_30] : memref<4x128xf32, #tpu.memory_space<vmem>>, vector<4x128xf32>
    tpu.vector_store %arg9[%c0_29, %c0_30], %92 {strides = array<i32>} : memref<4x128xf32, #tpu.memory_space<vmem>>, vector<4x128xf32>,
    %c0_31 = arith.constant 0 : index
    %c0_32 = arith.constant 0 : index
    %94 = vector.load %arg1[%c0_31, %c0_32] : memref<4x128xf32, #tpu.memory_space<vmem>>, vector<4x128xf32>
    %95 = math.absf %87 : vector<4x128xf32>
    %cst_33 = arith.constant 0.000000e+00 : f32
    %96 = vector.broadcast %cst_33 : f32 to vector<4x128xf32>
    %97 = arith.subf %96, %95 : vector<4x128xf32>
    %98 = math.exp %97 : vector<4x128xf32>
    %cst_34 = arith.constant 1.000000e+00 : f32
    %99 = vector.broadcast %cst_34 : f32 to vector<4x128xf32>
    %100 = arith.addf %99, %98 : vector<4x128xf32>
    %101 = math.log %100 : vector<4x128xf32>
    %cst_35 = arith.constant 0.000000e+00 : f32
    %102 = vector.broadcast %cst_35 : f32 to vector<4x128xf32>
    %103 = arith.minimumf %87, %102 : vector<4x128xf32>
    %104 = arith.subf %103, %101 : vector<4x128xf32>
    %cst_36 = arith.constant -1.000000e+02 : f32
    %105 = vector.broadcast %cst_36 : f32 to vector<4x128xf32>
    %106 = arith.maximumf %104, %105 : vector<4x128xf32>
    %cst_37 = arith.constant 0.000000e+00 : f32
    %107 = vector.broadcast %cst_37 : f32 to vector<4x128xf32>
    %108 = arith.subf %107, %87 : vector<4x128xf32>
    %cst_38 = arith.constant 0.000000e+00 : f32
    %109 = vector.broadcast %cst_38 : f32 to vector<4x128xf32>
    %110 = arith.minimumf %108, %109 : vector<4x128xf32>
    %111 = arith.subf %110, %101 : vector<4x128xf32>
    %cst_39 = arith.constant -1.000000e+02 : f32
    %112 = vector.broadcast %cst_39 : f32 to vector<4x128xf32>
    %113 = arith.maximumf %111, %112 : vector<4x128xf32>
    %114 = tpu.iota {dimensions = array<i32: 1>} : vector<1x128xi32>
    %c128_i32 = arith.constant 128 : i32
    %115 = vector.broadcast %c128_i32 : i32 to vector<1x128xi32>
    %116 = arith.cmpi slt, %114, %115 : vector<1x128xi32>
    %117 = arith.extui %116 : vector<1x128xi1> to vector<1x128xi32>
    %118 = arith.sitofp %117 : vector<1x128xi32> to vector<1x128xf32>
    %119 = arith.mulf %94, %106 : vector<4x128xf32>
    %cst_40 = arith.constant 1.000000e+00 : f32
    %120 = vector.broadcast %cst_40 : f32 to vector<4x128xf32>
    %121 = arith.subf %120, %94 : vector<4x128xf32>
    %122 = arith.mulf %121, %113 : vector<4x128xf32>
    %123 = arith.addf %119, %122 : vector<4x128xf32>
    %cst_41 = arith.constant 0.000000e+00 : f32
    %124 = vector.broadcast %cst_41 : f32 to vector<4x128xf32>
    %125 = arith.subf %124, %123 : vector<4x128xf32>
    %126 = vector.broadcast %118 : vector<1x128xf32> to vector<4x128xf32>
    %127 = arith.mulf %125, %126 : vector<4x128xf32>
    %128 = vector.broadcast %26 : vector<4x1xf32> to vector<4x128xf32>
    %129 = arith.mulf %127, %128 : vector<4x128xf32>
    %130 = vector.shape_cast %129 : vector<4x128xf32> to vector<1x4x128xf32>
    %cst_42 = arith.constant dense<0.000000e+00> : vector<1xf32>
    %131 = vector.multi_reduction <add>, %130, %cst_42 [1, 2] : vector<1x4x128xf32> to vector<1xf32>
    %132 = vector.shape_cast %131 : vector<1xf32> to vector<1x1x1xf32>
    %133 = vector.extract %132[0, 0, 0] : f32 from vector<1x1x1xf32>
    %cst_43 = arith.constant 3.906250e-03 : f32
    %134 = arith.mulf %133, %cst_43 : f32
    %c0_44 = arith.constant 0 : index
    %c0_45 = arith.constant 0 : index
    %135 = memref.load %arg10[%c0_44, %c0_45] : memref<1x4xf32, #tpu.memory_space<smem>>
    memref.store %134, %arg10[%c0_44, %c0_45] : memref<1x4xf32, #tpu.memory_space<smem>>
    %136 = vector.broadcast %28 : vector<4x1xf32> to vector<4x128xf32>
    %137 = arith.mulf %127, %136 : vector<4x128xf32>
    %138 = vector.shape_cast %137 : vector<4x128xf32> to vector<1x4x128xf32>
    %cst_46 = arith.constant dense<0.000000e+00> : vector<1xf32>
    %139 = vector.multi_reduction <add>, %138, %cst_46 [1, 2] : vector<1x4x128xf32> to vector<1xf32>
    %140 = vector.shape_cast %139 : vector<1xf32> to vector<1x1x1xf32>
    %141 = vector.extract %140[0, 0, 0] : f32 from vector<1x1x1xf32>
    %cst_47 = arith.constant 3.906250e-03 : f32
    %142 = arith.mulf %141, %cst_47 : f32
    %c0_48 = arith.constant 0 : index
    %c1_49 = arith.constant 1 : index
    %143 = memref.load %arg10[%c0_48, %c1_49] : memref<1x4xf32, #tpu.memory_space<smem>>
    memref.store %142, %arg10[%c0_48, %c1_49] : memref<1x4xf32, #tpu.memory_space<smem>>
    %c0_50 = arith.constant 0 : index
    %c0_51 = arith.constant 0 : index
    %144 = vector.load %arg4[%c0_50, %c0_51] : memref<512x128xf32, #tpu.memory_space<vmem>>, vector<512x128xf32>
    %c0_52 = arith.constant 0 : index
    %c0_53 = arith.constant 0 : index
    %145 = vector.load %arg5[%c0_52, %c0_53] : memref<512x128xf32, #tpu.memory_space<vmem>>, vector<512x128xf32>
    %146 = arith.subf %144, %145 : vector<512x128xf32>
    %147 = math.absf %146 : vector<512x128xf32>
    %148 = vector.shape_cast %147 : vector<512x128xf32> to vector<1x512x128xf32>
    %cst_54 = arith.constant dense<0.000000e+00> : vector<1xf32>
    %149 = vector.multi_reduction <add>, %148, %cst_54 [1, 2] : vector<1x512x128xf32> to vector<1xf32>
    %150 = vector.shape_cast %149 : vector<1xf32> to vector<1x1x1xf32>
    %151 = vector.extract %150[0, 0, 0] : f32 from vector<1x1x1xf32>
    %cst_55 = arith.constant 6.553600e+04 : f32
    %152 = arith.divf %151, %cst_55 : f32
    %c0_56 = arith.constant 0 : index
    %c2_57 = arith.constant 2 : index
    %153 = memref.load %arg10[%c0_56, %c2_57] : memref<1x4xf32, #tpu.memory_space<smem>>
    memref.store %152, %arg10[%c0_56, %c2_57] : memref<1x4xf32, #tpu.memory_space<smem>>
    %c0_58 = arith.constant 0 : index
    %c0_59 = arith.constant 0 : index
    %154 = vector.load %arg8[%c0_58, %c0_59] : memref<4x128xf32, #tpu.memory_space<vmem>>, vector<4x128xf32>
    %c0_60 = arith.constant 0 : index
    %c0_61 = arith.constant 0 : index
    %155 = vector.load %arg6[%c0_60, %c0_61] : memref<4x128xf32, #tpu.memory_space<vmem>>, vector<4x128xf32>
    %c0_62 = arith.constant 0 : index
    %c0_63 = arith.constant 0 : index
    %156 = vector.load %arg7[%c0_62, %c0_63] : memref<4x128xf32, #tpu.memory_space<vmem>>, vector<4x128xf32>
    %157 = arith.subf %155, %156 : vector<4x128xf32>
    %158 = math.absf %157 : vector<4x128xf32>
    %159 = arith.mulf %154, %158 : vector<4x128xf32>
    %160 = vector.shape_cast %159 : vector<4x128xf32> to vector<1x4x128xf32>
    %cst_64 = arith.constant dense<0.000000e+00> : vector<1xf32>
    %161 = vector.multi_reduction <add>, %160, %cst_64 [1, 2] : vector<1x4x128xf32> to vector<1xf32>
    %162 = vector.shape_cast %161 : vector<1xf32> to vector<1x1x1xf32>
    %163 = vector.extract %162[0, 0, 0] : f32 from vector<1x1x1xf32>
    %cst_65 = arith.constant 5.120000e+02 : f32
    %164 = arith.divf %163, %cst_65 : f32
    %c0_66 = arith.constant 0 : index
    %c3_67 = arith.constant 3 : index
    %165 = memref.load %arg10[%c0_66, %c3_67] : memref<1x4xf32, #tpu.memory_space<smem>>
    memref.store %164, %arg10[%c0_66, %c3_67] : memref<1x4xf32, #tpu.memory_space<smem>>
    return
  }
}

</mosaic_0001>

<bundles_post_ra>
// kernel: _z2z_glyph_distance_losses.1
= control target key start
LH: loop header
LB: loop body
LE: loop exit
PB: predicated region body
PF: predicated region fallthrough
CT: control target
= control target key end

     0   :  { %s3150_s0 = inlined_call_operand.vmem [shape: f32[4,512], index: 0, kind: input, shape index: {}]   ;;  %s3151_s1 = inlined_call_operand.vmem [shape: f32[4,128], index: 1, kind: input, shape index: {}]   ;;  %s3152_s2 = inlined_call_operand.vmem [shape: bf16[1280,256], index: 2, kind: input, shape index: {}]   ;;  %s3153_s3 = inlined_call_operand.vmem [shape: f32[8,256], index: 3, kind: input, shape index: {}]   ;;  %s3154_s4 = inlined_call_operand.vmem [shape: f32[512,128], index: 4, kind: input, shape index: {}]   ;;  %s3155_s5 = inlined_call_operand.vmem [shape: f32[512,128], index: 5, kind: input, shape index: {}]   ;;  %s3156_s6 = inlined_call_operand.vmem [shape: f32[4,128], index: 6, kind: input, shape index: {}]   ;;  %s3157_s7 = inlined_call_operand.vmem [shape: f32[4,128], index: 7, kind: input, shape index: {}]   ;;  %s3158_s8 = inlined_call_operand.vmem [shape: f32[4,128], index: 8, kind: input, shape index: {}]   ;;  %s3159_s9 = inlined_call_operand.vmem [shape: f32[4,128], index: 9, kind: output, shape index: {0}]   ;;  %s3160_s10 = inlined_call_operand.vmem [shape: f32[1,4], index: 10, kind: output, shape index: {1}]  }
   0x1   :  { %v1946_v0 = vld [vmem:[%s3152_s2 + $0x74] ss:$8 sps:$4 sm:$0xff]   ;;  %v1950_v2 = vld [vmem:[%s3152_s2 + $0x70] ss:$8 sps:$4 sm:$0xff]   ;;  %v1952_v4 = vld [vmem:[%s3152_s2 + $0x64] ss:$8 sps:$4 sm:$0xff]  }
   0x2   :  { %v1948_v1 = vld [vmem:[%s3152_s2 + $0x174] ss:$8 sps:$4 sm:$0xff]   ;;  %453 = vmatprep.subr.bf16.mxu0 %v1946_v0  ;;  %v1951_v3 = vld [vmem:[%s3152_s2 + $0x170] ss:$8 sps:$4 sm:$0xff]   ;;  %v1954_v5 = vld [vmem:[%s3152_s2 + $0x164] ss:$8 sps:$4 sm:$0xff]  }
   0x3   :  { %494 = vmatprep.subr.bf16.mxu1 %v1948_v1  ;;  %454 = vmatpush1.bf16.msra.mxu0 %v1950_v2  ;;  %v1956_v6 = vld [vmem:[%s3152_s2 + $0x60] ss:$8 sps:$4 sm:$0xff]   ;;  %v1958_v8 = vld [vmem:[%s3152_s2 + $0x54] ss:$8 sps:$4 sm:$0xff]   ;;  %v1962_v10 = vld [vmem:[%s3152_s2 + $0x50] ss:$8 sps:$4 sm:$0xff]  }
   0x4   :  { %495 = vmatpush1.bf16.msra.mxu1 %v1951_v3  ;;  %455 = vmatprep.subr.bf16.mxu0 %v1952_v4  ;;  %v1957_v7 = vld [vmem:[%s3152_s2 + $0x160] ss:$8 sps:$4 sm:$0xff]   ;;  %v1960_v9 = vld [vmem:[%s3152_s2 + $0x154] ss:$8 sps:$4 sm:$0xff]   ;;  %v1963_v11 = vld [vmem:[%s3152_s2 + $0x150] ss:$8 sps:$4 sm:$0xff]  }
   0x5   :  { %496 = vmatprep.subr.bf16.mxu1 %v1954_v5  ;;  %v1964_v12 = vld [vmem:[%s3152_s2 + $0x44] ss:$8 sps:$4 sm:$0xff]   ;;  %v1968_v14 = vld [vmem:[%s3152_s2 + $0x40] ss:$8 sps:$4 sm:$0xff]   ;;  %v1970_v16 = vld [vmem:[%s3152_s2 + $0x34] ss:$8 sps:$4 sm:$0xff]  }
   0x6   :  { %v1966_v13 = vld [vmem:[%s3152_s2 + $0x144] ss:$8 sps:$4 sm:$0xff]   ;;  %v1969_v15 = vld [vmem:[%s3152_s2 + $0x140] ss:$8 sps:$4 sm:$0xff]   ;;  %v1972_v17 = vld [vmem:[%s3152_s2 + $0x134] ss:$8 sps:$4 sm:$0xff]  }
   0x7   :  { %456 = vmatpush1.bf16.msra.mxu0 %v1956_v6  ;;  %v1974_v18 = vld [vmem:[%s3152_s2 + $0x30] ss:$8 sps:$4 sm:$0xff]   ;;  %v1976_v20 = vld [vmem:[%s3152_s2 + $0x24] ss:$8 sps:$4 sm:$0xff]   ;;  %v1980_v22 = vld [vmem:[%s3152_s2 + $0x20] ss:$8 sps:$4 sm:$0xff]  }
   0x8   :  { %497 = vmatpush1.bf16.msra.mxu1 %v1957_v7  ;;  %457 = vmatprep.subr.bf16.mxu0 %v1958_v8  ;;  %v1975_v19 = vld [vmem:[%s3152_s2 + $0x130] ss:$8 sps:$4 sm:$0xff]   ;;  %v1978_v21 = vld [vmem:[%s3152_s2 + $0x124] ss:$8 sps:$4 sm:$0xff]   ;;  %v1981_v23 = vld [vmem:[%s3152_s2 + $0x120] ss:$8 sps:$4 sm:$0xff]  }
   0x9   :  { %498 = vmatprep.subr.bf16.mxu1 %v1960_v9  ;;  %v1982_v24 = vld [vmem:[%s3152_s2 + $0x14] ss:$8 sps:$4 sm:$0xff]   ;;  %v1986_v26 = vld [vmem:[%s3152_s2 + $0x10] ss:$8 sps:$4 sm:$0xff]   ;;  %v1988_v28 = vld [vmem:[%s3152_s2 + $0x4] ss:$8 sps:$4 sm:$0xff]  }
   0xa   :  { %v1984_v25 = vld [vmem:[%s3152_s2 + $0x114] ss:$8 sps:$4 sm:$0xff]   ;;  %v1987_v27 = vld [vmem:[%s3152_s2 + $0x110] ss:$8 sps:$4 sm:$0xff]   ;;  %v1990_v29 = vld [vmem:[%s3152_s2 + $0x104] ss:$8 sps:$4 sm:$0xff]  }
   0xb   :  { %458 = vmatpush1.bf16.msra.mxu0 %v1962_v10  ;;  %v1992_v30 = vld [vmem:[%s3152_s2] ss:$8 sps:$4 sm:$0xff]   ;;  %v1994_v32 = vld [vmem:[%s3152_s2 + $0xf4] ss:$8 sps:$4 sm:$0xff]   ;;  %v1998_v34 = vld [vmem:[%s3152_s2 + $0xf0] ss:$8 sps:$4 sm:$0xff]  }
   0xc   :  { %499 = vmatpush1.bf16.msra.mxu1 %v1963_v11  ;;  %459 = vmatprep.subr.bf16.mxu0 %v1964_v12  ;;  %v1993_v31 = vld [vmem:[%s3152_s2 + $0x100] ss:$8 sps:$4 sm:$0xff]   ;;  %v1996_v33 = vld [vmem:[%s3152_s2 + $0x1f4] ss:$8 sps:$4 sm:$0xff]   ;;  %v1999_v35 = vld [vmem:[%s3152_s2 + $0x1f0] ss:$8 sps:$4 sm:$0xff]  }
   0xd   :  { %500 = vmatprep.subr.bf16.mxu1 %v1966_v13  ;;  %v2000_v36 = vld [vmem:[%s3152_s2 + $0xe4] ss:$8 sps:$4 sm:$0xff]   ;;  %v2004_v38 = vld [vmem:[%s3152_s2 + $0xe0] ss:$8 sps:$4 sm:$0xff]   ;;  %v2006_v40 = vld [vmem:[%s3152_s2 + $0xd4] ss:$8 sps:$4 sm:$0xff]  }
   0xe   :  { %v2002_v37 = vld [vmem:[%s3152_s2 + $0x1e4] ss:$8 sps:$4 sm:$0xff]   ;;  %v2005_v39 = vld [vmem:[%s3152_s2 + $0x1e0] ss:$8 sps:$4 sm:$0xff]   ;;  %v2008_v41 = vld [vmem:[%s3152_s2 + $0x1d4] ss:$8 sps:$4 sm:$0xff]  }
   0xf   :  { %460 = vmatpush1.bf16.msra.mxu0 %v1968_v14  ;;  %v2010_v42 = vld [vmem:[%s3152_s2 + $0xd0] ss:$8 sps:$4 sm:$0xff]   ;;  %v2012_v44 = vld [vmem:[%s3152_s2 + $0xc4] ss:$8 sps:$4 sm:$0xff]   ;;  %v2016_v49 = vld [vmem:[%s3152_s2 + $0xc0] ss:$8 sps:$4 sm:$0xff]  }
  0x10   :  { %501 = vmatpush1.bf16.msra.mxu1 %v1969_v15  ;;  %461 = vmatprep.subr.bf16.mxu0 %v1970_v16  ;;  %v2011_v43 = vld [vmem:[%s3152_s2 + $0x1d0] ss:$8 sps:$4 sm:$0xff]   ;;  %v2014_v45 = vld [vmem:[%s3152_s2 + $0x1c4] ss:$8 sps:$4 sm:$0xff]   ;;  %v2017_v50 = vld [vmem:[%s3152_s2 + $0x1c0] ss:$8 sps:$4 sm:$0xff]  }
  0x11   :  { %502 = vmatprep.subr.bf16.mxu1 %v1972_v17  ;;  %v46_v46 = vld [vmem:[%s3150_s0] sm:$0xff]  ;;  %v47_v48 = vld [vmem:[%s3150_s0 + $0x8] sm:$0xff]  ;;  %v2018_v52 = vld [vmem:[%s3152_s2 + $0xb4] ss:$8 sps:$4 sm:$0xff]  }
  0x12   :  { %v50_v47 = vcombine.high %v46_v46, %v46_v46  ;;  %v51_v51 = vcombine.high %v47_v48, %v47_v48  ;;  %v2020_v53 = vld [vmem:[%s3152_s2 + $0x1b4] ss:$8 sps:$4 sm:$0xff]   ;;  %v2022_v56 = vld [vmem:[%s3152_s2 + $0xb0] ss:$8 sps:$4 sm:$0xff]   ;;  %v2024_v58 = vld [vmem:[%s3152_s2 + $0xa4] ss:$8 sps:$4 sm:$0xff]   ;;  %v54_v8 = vpack.c.bf16 %v46_v46, %v46_v46  ;;  %v56_v9 = vpack.c.bf16 %v47_v48, %v47_v48 }
  0x13   :  { %462 = vmatpush1.bf16.msra.mxu0 %v1974_v18  ;;  %v2023_v57 = vld [vmem:[%s3152_s2 + $0x1b0] ss:$8 sps:$4 sm:$0xff]   ;;  %v2026_v59 = vld [vmem:[%s3152_s2 + $0x1a4] ss:$8 sps:$4 sm:$0xff]   ;;  %v2028_v60 = vld [vmem:[%s3152_s2 + $0xa0] ss:$8 sps:$4 sm:$0xff]  }
  0x14   :  { %503 = vmatpush1.bf16.msra.mxu1 %v1975_v19  ;;  %463 = vmatprep.subr.bf16.mxu0 %v1976_v20  ;;  %v55_v54 = vpack.c.bf16 %v50_v47, %v50_v47  ;;  %v57_v55 = vpack.c.bf16 %v51_v51, %v51_v51  ;;  %v2029_v61 = vld [vmem:[%s3152_s2 + $0x1a0] ss:$8 sps:$4 sm:$0xff]   ;;  %v2030_v62 = vld [vmem:[%s3152_s2 + $0x94] ss:$8 sps:$4 sm:$0xff]   ;;  %v2034_v0 = vld [vmem:[%s3152_s2 + $0x90] ss:$8 sps:$4 sm:$0xff]  }
  0x15   :  { %504 = vmatprep.subr.bf16.mxu1 %v1978_v21  ;;  %v2032_v63 = vld [vmem:[%s3152_s2 + $0x194] ss:$8 sps:$4 sm:$0xff]   ;;  %v2035_v1 = vld [vmem:[%s3152_s2 + $0x190] ss:$8 sps:$4 sm:$0xff]   ;;  %v2036_v2 = vld [vmem:[%s3152_s2 + $0x84] ss:$8 sps:$4 sm:$0xff]  }
  0x16   :  { %485 = vmatprep.mubr.bf16.mxu0 %v55_v54  ;;  %526 = vmatprep.mubr.bf16.mxu1 %v57_v55  ;;  %v2038_v3 = vld [vmem:[%s3152_s2 + $0x184] ss:$8 sps:$4 sm:$0xff]   ;;  %v2040_v4 = vld [vmem:[%s3152_s2 + $0x80] ss:$8 sps:$4 sm:$0xff]   ;;  %v2046_v6 = vld [vmem:[%s3152_s2 + $0x274] ss:$8 sps:$4 sm:$0xff]  }
  0x17   :  { %464 = vmatpush1.bf16.msra.mxu0 %v1980_v22  ;;  %v2041_v5 = vld [vmem:[%s3152_s2 + $0x180] ss:$8 sps:$4 sm:$0xff]   ;;  %v2044_v7 = vld [vmem:[%s3152_s2 + $0x270] ss:$8 sps:$4 sm:$0xff]   ;;  %v2049_v10 = vld [vmem:[%s3152_s2 + $0x264] ss:$8 sps:$4 sm:$0xff]  }
  0x18   :  { %505 = vmatpush1.bf16.msra.mxu1 %v1981_v23  ;;  %465 = vmatprep.subr.bf16.mxu0 %v1982_v24  ;;  %v2047_v11 = vld [vmem:[%s3152_s2 + $0x260] ss:$8 sps:$4 sm:$0xff]   ;;  %v2052_v12 = vld [vmem:[%s3152_s2 + $0x254] ss:$8 sps:$4 sm:$0xff]   ;;  %v2050_v13 = vld [vmem:[%s3152_s2 + $0x250] ss:$8 sps:$4 sm:$0xff]  }
  0x19   :  { %506 = vmatprep.subr.bf16.mxu1 %v1984_v25  ;;  %v2055_v14 = vld [vmem:[%s3152_s2 + $0x244] ss:$8 sps:$4 sm:$0xff]   ;;  %v2053_v15 = vld [vmem:[%s3152_s2 + $0x240] ss:$8 sps:$4 sm:$0xff]   ;;  %v2058_v16 = vld [vmem:[%s3152_s2 + $0x234] ss:$8 sps:$4 sm:$0xff]  }
  0x1a   :  { %v2056_v17 = vld [vmem:[%s3152_s2 + $0x230] ss:$8 sps:$4 sm:$0xff]   ;;  %v2061_v18 = vld [vmem:[%s3152_s2 + $0x224] ss:$8 sps:$4 sm:$0xff]   ;;  %v2059_v19 = vld [vmem:[%s3152_s2 + $0x220] ss:$8 sps:$4 sm:$0xff]  }
  0x1b   :  { %466 = vmatpush1.bf16.msra.mxu0 %v1986_v26  ;;  %v2064_v20 = vld [vmem:[%s3152_s2 + $0x214] ss:$8 sps:$4 sm:$0xff]  }
  0x1c   :  { %507 = vmatpush1.bf16.msra.mxu1 %v1987_v27  ;;  %467 = vmatprep.subr.bf16.mxu0 %v1988_v28 }
  0x1d   :  { %508 = vmatprep.subr.bf16.mxu1 %v1990_v29 }
  0x1f   :  { %468 = vmatpush1.bf16.msra.mxu0 %v1992_v30 }
  0x20   :  { %509 = vmatpush1.bf16.msra.mxu1 %v1993_v31  ;;  %469 = vmatprep.subr.bf16.mxu0 %v1994_v32 }
  0x21   :  { %510 = vmatprep.subr.bf16.mxu1 %v1996_v33 }
  0x23   :  { %470 = vmatpush2.bf16.msra.mxu0 %v1998_v34 }
  0x24   :  { %511 = vmatpush2.bf16.msra.mxu1 %v1999_v35  ;;  %471 = vmatprep.subr.bf16.mxu0 %v2000_v36 }
  0x25   :  { %512 = vmatprep.subr.bf16.mxu1 %v2002_v37 }
  0x27   :  { %472 = vmatpush2.bf16.msra.mxu0 %v2004_v38 }
  0x28   :  { %513 = vmatpush2.bf16.msra.mxu1 %v2005_v39  ;;  %473 = vmatprep.subr.bf16.mxu0 %v2006_v40 }
  0x29   :  { %514 = vmatprep.subr.bf16.mxu1 %v2008_v41 }
  0x2b   :  { %474 = vmatpush2.bf16.msra.mxu0 %v2010_v42 }
  0x2c   :  { %515 = vmatpush2.bf16.msra.mxu1 %v2011_v43  ;;  %475 = vmatprep.subr.bf16.mxu0 %v2012_v44 }
  0x2d   :  { %516 = vmatprep.subr.bf16.mxu1 %v2014_v45 }
  0x2f   :  { %476 = vmatpush2.bf16.msra.mxu0 %v2016_v49 }
  0x30   :  { %517 = vmatpush2.bf16.msra.mxu1 %v2017_v50  ;;  %477 = vmatprep.subr.bf16.mxu0 %v2018_v52 }
  0x31   :  { %518 = vmatprep.subr.bf16.mxu1 %v2020_v53 }
  0x33   :  { %478 = vmatpush2.bf16.msra.mxu0 %v2022_v56 }
  0x34   :  { %519 = vmatpush2.bf16.msra.mxu1 %v2023_v57  ;;  %479 = vmatprep.subr.bf16.mxu0 %v2024_v58 }
  0x35   :  { %520 = vmatprep.subr.bf16.mxu1 %v2026_v59 }
  0x37   :  { %480 = vmatpush2.bf16.msra.mxu0 %v2028_v60 }
  0x38   :  { %521 = vmatpush2.bf16.msra.mxu1 %v2029_v61  ;;  %481 = vmatprep.subr.bf16.mxu0 %v2030_v62 }
  0x39   :  { %522 = vmatprep.subr.bf16.mxu1 %v2032_v63 }
  0x3b   :  { %482 = vmatpush2.bf16.msra.mxu0 %v2034_v0 }
  0x3c   :  { %523 = vmatpush2.bf16.msra.mxu1 %v2035_v1  ;;  %483 = vmatprep.subr.bf16.mxu0 %v2036_v2 }
  0x3d   :  { %524 = vmatprep.subr.bf16.mxu1 %v2038_v3 }
  0x3f   :  { %484 = vmatpush2.bf16.msra.mxu0 %v2040_v4 }
  0x40   :  { %525 = vmatpush2.bf16.msra.mxu1 %v2041_v5  ;;  %740 = vmatprep.subr.bf16.mxu0 %v2046_v6 }
  0x42   :  { %486 = vmatmul.mubr.bf16.vlgmr.msra.gmra.mxu0 %v54_v8 }
  0x43   :  { %527 = vmatmul.mubr.bf16.vlgmr.msra.gmra.mxu1 %v56_v9  ;;  %741 = vmatpush1.bf16.msra.mxu0 %v2044_v7 }
  0x44   :  { %742 = vmatprep.subr.bf16.mxu0 %v2049_v10 }
  0x47   :  { %743 = vmatpush1.bf16.msra.mxu0 %v2047_v11 }
  0x48   :  { %744 = vmatprep.subr.bf16.mxu0 %v2052_v12 }
  0x4b   :  { %745 = vmatpush1.bf16.msra.mxu0 %v2050_v13 }
  0x4c   :  { %746 = vmatprep.subr.bf16.mxu0 %v2055_v14 }
  0x4f   :  { %747 = vmatpush1.bf16.msra.mxu0 %v2053_v15 }
  0x50   :  { %748 = vmatprep.subr.bf16.mxu0 %v2058_v16 }
  0x53   :  { %749 = vmatpush1.bf16.msra.mxu0 %v2056_v17 }
  0x54   :  { %750 = vmatprep.subr.bf16.mxu0 %v2061_v18 }
  0x55   :  { %16 = vsyncpa [#allocation3], 0  ;;  %v2062_v21 = vld [vmem:[%s3152_s2 + $0x210] ss:$8 sps:$4 sm:$0xff]   ;;  %v2067_v22 = vld [vmem:[%s3152_s2 + $0x204] ss:$8 sps:$4 sm:$0xff]   ;;  %v123_v40 = vlaneseq }
  0x56   :  { %v2065_v23 = vld [vmem:[%s3152_s2 + $0x200] ss:$8 sps:$4 sm:$0xff]   ;;  %v2070_v24 = vld [vmem:[%s3152_s2 + $0x2f4] ss:$8 sps:$4 sm:$0xff]   ;;  %v2068_v25 = vld [vmem:[%s3152_s2 + $0x2f0] ss:$8 sps:$4 sm:$0xff]  }
  0x57   :  { %751 = vmatpush1.bf16.msra.mxu0 %v2059_v19  ;;  %v2073_v26 = vld [vmem:[%s3152_s2 + $0x2e4] ss:$8 sps:$4 sm:$0xff]   ;;  %v2071_v27 = vld [vmem:[%s3152_s2 + $0x2e0] ss:$8 sps:$4 sm:$0xff]   ;;  %v2076_v28 = vld [vmem:[%s3152_s2 + $0x2d4] ss:$8 sps:$4 sm:$0xff]  }
  0x58   :  { %752 = vmatprep.subr.bf16.mxu0 %v2064_v20  ;;  %v2074_v29 = vld [vmem:[%s3152_s2 + $0x2d0] ss:$8 sps:$4 sm:$0xff]   ;;  %v2079_v30 = vld [vmem:[%s3152_s2 + $0x2c4] ss:$8 sps:$4 sm:$0xff]   ;;  %v2077_v31 = vld [vmem:[%s3152_s2 + $0x2c0] ss:$8 sps:$4 sm:$0xff]  }
  0x59   :  { %v2082_v32 = vld [vmem:[%s3152_s2 + $0x2b4] ss:$8 sps:$4 sm:$0xff]   ;;  %v2080_v33 = vld [vmem:[%s3152_s2 + $0x2b0] ss:$8 sps:$4 sm:$0xff]   ;;  %v2085_v34 = vld [vmem:[%s3152_s2 + $0x2a4] ss:$8 sps:$4 sm:$0xff]  }
  0x5a   :  { %v2083_v35 = vld [vmem:[%s3152_s2 + $0x2a0] ss:$8 sps:$4 sm:$0xff]   ;;  %v2088_v36 = vld [vmem:[%s3152_s2 + $0x294] ss:$8 sps:$4 sm:$0xff]   ;;  %v2086_v37 = vld [vmem:[%s3152_s2 + $0x290] ss:$8 sps:$4 sm:$0xff]  }
  0x5b   :  { %753 = vmatpush1.bf16.msra.mxu0 %v2062_v21  ;;  %v2091_v38 = vld [vmem:[%s3152_s2 + $0x284] ss:$8 sps:$4 sm:$0xff]   ;;  %v2089_v39 = vld [vmem:[%s3152_s2 + $0x280] ss:$8 sps:$4 sm:$0xff]   ;;  %v2533_v41 = vshrl.u32 %v123_v40, 7  ;;  %vm795_vm2 = vcmask 1043456  }
  0x5c   :  { %754 = vmatprep.subr.bf16.mxu0 %v2067_v22  ;;  %v36_v43 = vld [vmem:[%s3153_s3] ss:$8 sm:$0x3]  ;;  %v2094_v61 = vld [vmem:[%s3152_s2 + $0x374] ss:$8 sps:$4 sm:$0xff]   ;;  %s1753_s24 = sshll.u32 %s3160_s10, 4  ;;  %s1754_s24 = int_to_ptr.vmem [resolvable:$true] %s1753_s24 }
  0x5d   :  { %v2536_v42 = vsub.s32 0, %v2533_v41  ;;  %v2542_v44 = vsub.s32 1, %v2533_v41  ;;  %v2092_v62 = vld [vmem:[%s3152_s2 + $0x370] ss:$8 sps:$4 sm:$0xff]   ;;  %1119 = vmatprep.subr.bf16.mxu1 %v2094_v61  ;;  %v2097_v63 = vld [vmem:[%s3152_s2 + $0x364] ss:$8 sps:$4 sm:$0xff]   ;;  %p2173_p1 = scmp.lt.s32.totalorder %s1754_s24, %s1754_s24 }
  0x5e   :  { %1120 = vmatpush1.bf16.msra.mxu1 %v2092_v62  ;;  %v2095_v0 = vld [vmem:[%s3152_s2 + $0x360] ss:$8 sps:$4 sm:$0xff]   ;;  %v2100_v1 = vld [vmem:[%s3152_s2 + $0x354] ss:$8 sps:$4 sm:$0xff]   ;;  %v2098_v2 = vld [vmem:[%s3152_s2 + $0x350] ss:$8 sps:$4 sm:$0xff]  }
  0x5f   :  { %755 = vmatpush1.bf16.msra.mxu0 %v2065_v23  ;;  %v126_v45 = vrot.slane %v36_v43, %v2536_v42  ;;  %v130_v46 = vrot.slane %v36_v43, %v2542_v44  ;;  %1121 = vmatprep.subr.bf16.mxu1 %v2097_v63  ;;  %v2103_v3 = vld [vmem:[%s3152_s2 + $0x344] ss:$8 sps:$4 sm:$0xff]   ;;  %v2101_v4 = vld [vmem:[%s3152_s2 + $0x340] ss:$8 sps:$4 sm:$0xff]   ;;  %v2106_v5 = vld [vmem:[%s3152_s2 + $0x334] ss:$8 sps:$4 sm:$0xff]  }
  0x60   :  { %756 = vmatprep.subr.bf16.mxu0 %v2070_v24  ;;  %v2104_v6 = vld [vmem:[%s3152_s2 + $0x330] ss:$8 sps:$4 sm:$0xff]   ;;  %v2109_v7 = vld [vmem:[%s3152_s2 + $0x324] ss:$8 sps:$4 sm:$0xff]   ;;  %v2107_v8 = vld [vmem:[%s3152_s2 + $0x320] ss:$8 sps:$4 sm:$0xff]  }
  0x61   :  { %v2112_v9 = vld [vmem:[%s3152_s2 + $0x314] ss:$8 sps:$4 sm:$0xff]   ;;  %v2110_v10 = vld [vmem:[%s3152_s2 + $0x310] ss:$8 sps:$4 sm:$0xff]   ;;  %v2115_v11 = vld [vmem:[%s3152_s2 + $0x304] ss:$8 sps:$4 sm:$0xff]  }
  0x62   :  { %1122 = vmatpush1.bf16.msra.mxu1 %v2095_v0  ;;  %v2113_v12 = vld [vmem:[%s3152_s2 + $0x300] ss:$8 sps:$4 sm:$0xff]   ;;  %v2118_v13 = vld [vmem:[%s3152_s2 + $0x3f4] ss:$8 sps:$4 sm:$0xff]   ;;  %v2116_v14 = vld [vmem:[%s3152_s2 + $0x3f0] ss:$8 sps:$4 sm:$0xff]  }
  0x63   :  { %757 = vmatpush2.bf16.msra.mxu0 %v2068_v25  ;;  %1123 = vmatprep.subr.bf16.mxu1 %v2100_v1  ;;  %v2121_v15 = vld [vmem:[%s3152_s2 + $0x3e4] ss:$8 sps:$4 sm:$0xff]   ;;  %v2119_v16 = vld [vmem:[%s3152_s2 + $0x3e0] ss:$8 sps:$4 sm:$0xff]   ;;  %v2124_v17 = vld [vmem:[%s3152_s2 + $0x3d4] ss:$8 sps:$4 sm:$0xff]  }
  0x64   :  { %758 = vmatprep.subr.bf16.mxu0 %v2073_v26  ;;  %v2122_v18 = vld [vmem:[%s3152_s2 + $0x3d0] ss:$8 sps:$4 sm:$0xff]   ;;  %v2127_v19 = vld [vmem:[%s3152_s2 + $0x3c4] ss:$8 sps:$4 sm:$0xff]   ;;  %v2125_v20 = vld [vmem:[%s3152_s2 + $0x3c0] ss:$8 sps:$4 sm:$0xff]  }
  0x65   :  { %v2130_v21 = vld [vmem:[%s3152_s2 + $0x3b4] ss:$8 sps:$4 sm:$0xff]   ;;  %v2128_v22 = vld [vmem:[%s3152_s2 + $0x3b0] ss:$8 sps:$4 sm:$0xff]   ;;  %v2133_v23 = vld [vmem:[%s3152_s2 + $0x3a4] ss:$8 sps:$4 sm:$0xff]  }
  0x66   :  { %1124 = vmatpush1.bf16.msra.mxu1 %v2098_v2  ;;  %v2131_v24 = vld [vmem:[%s3152_s2 + $0x3a0] ss:$8 sps:$4 sm:$0xff]   ;;  %v2134_v25 = vld [vmem:[%s3152_s2 + $0x390] ss:$8 sps:$4 sm:$0xff]   ;;  %v2136_v26 = vld [vmem:[%s3152_s2 + $0x394] ss:$8 sps:$4 sm:$0xff]  }
  0x67   :  { %759 = vmatpush2.bf16.msra.mxu0 %v2071_v27  ;;  %1125 = vmatprep.subr.bf16.mxu1 %v2103_v3  ;;  %v2139_v27 = vld [vmem:[%s3152_s2 + $0x384] ss:$8 sps:$4 sm:$0xff]   ;;  %v2151_v40 = vld [vmem:[%s3152_s2 + $0x420] ss:$8 sps:$4 sm:$0xff]   ;;  %vm789_vm0 = vcmp.lt.s32.totalorder %v2533_v41, 2  ;;  %s2168_s11 = scalar_lea.vmem %s1754_s24, 16 }
  0x68   :  { %760 = vmatprep.subr.bf16.mxu0 %v2076_v28  ;;  %v2137_v28 = vld [vmem:[%s3152_s2 + $0x380] ss:$8 sps:$4 sm:$0xff]   ;;  %p2169_p0 = scmp.ne.s32.totalorder %s1754_s24, %s2168_s11  ;;  %p2174_p2 = scmp.lt.s32.totalorder %s2168_s11, %s2168_s11 }
  0x69   :  { %v1764_v43 = vld [vmem:[%s3153_s3 + $0x1] ss:$8 sm:$0x3] }
  0x6a   :  { %1126 = vmatpush1.bf16.msra.mxu1 %v2101_v4  ;;  %p2175_p3 = por %p2174_p2, %p2173_p1 }
  0x6b   :  { %761 = vmatpush2.bf16.msra.mxu0 %v2074_v29  ;;  %1127 = vmatprep.subr.bf16.mxu1 %v2106_v5  ;;  %v2140_v29 = vld [vmem:[%s3152_s2 + $0x4f0] ss:$8 sps:$4 sm:$0xff]  }
  0x6c   :  { %762 = vmatprep.subr.bf16.mxu0 %v2079_v30  ;;  %v2141_v30 = vld [vmem:[%s3152_s2 + $0x470] ss:$8 sps:$4 sm:$0xff]   ;;  %p2176_p4 = pnand %p2175_p3, %p2169_p0 }
  0x6e   :  { %1128 = vmatpush1.bf16.msra.mxu1 %v2104_v6 }
  0x6f   :  { %763 = vmatpush2.bf16.msra.mxu0 %v2077_v31  ;;  %1129 = vmatprep.subr.bf16.mxu1 %v2109_v7  ;;  %v2142_v31 = vld [vmem:[%s3152_s2 + $0x4e0] ss:$8 sps:$4 sm:$0xff]  }
  0x70   :  { %764 = vmatprep.subr.bf16.mxu0 %v2082_v32  ;;  %v2143_v32 = vld [vmem:[%s3152_s2 + $0x460] ss:$8 sps:$4 sm:$0xff]  }
  0x72   :  { %1130 = vmatpush1.bf16.msra.mxu1 %v2107_v8 }
  0x73   :  { %765 = vmatpush2.bf16.msra.mxu0 %v2080_v33  ;;  %1131 = vmatprep.subr.bf16.mxu1 %v2112_v9  ;;  %v2144_v33 = vld [vmem:[%s3152_s2 + $0x4d0] ss:$8 sps:$4 sm:$0xff]  }
  0x74   :  { %766 = vmatprep.subr.bf16.mxu0 %v2085_v34  ;;  %v2145_v34 = vld [vmem:[%s3152_s2 + $0x450] ss:$8 sps:$4 sm:$0xff]  }
  0x76   :  { %1132 = vmatpush1.bf16.msra.mxu1 %v2110_v10 }
  0x77   :  { %767 = vmatpush2.bf16.msra.mxu0 %v2083_v35  ;;  %1133 = vmatprep.subr.bf16.mxu1 %v2115_v11  ;;  %v2146_v35 = vld [vmem:[%s3152_s2 + $0x4c0] ss:$8 sps:$4 sm:$0xff]  }
  0x78   :  { %768 = vmatprep.subr.bf16.mxu0 %v2088_v36  ;;  %v2147_v36 = vld [vmem:[%s3152_s2 + $0x440] ss:$8 sps:$4 sm:$0xff]  }
  0x7a   :  { %1134 = vmatpush1.bf16.msra.mxu1 %v2113_v12 }
  0x7b   :  { %769 = vmatpush2.bf16.msra.mxu0 %v2086_v37  ;;  %1135 = vmatprep.subr.bf16.mxu1 %v2118_v13  ;;  %v2148_v37 = vld [vmem:[%s3152_s2 + $0x4b0] ss:$8 sps:$4 sm:$0xff]  }
  0x7c   :  { %770 = vmatprep.subr.bf16.mxu0 %v2091_v38  ;;  %v2149_v38 = vld [vmem:[%s3152_s2 + $0x430] ss:$8 sps:$4 sm:$0xff]  }
  0x7e   :  { %1136 = vmatpush2.bf16.msra.mxu1 %v2116_v14 }
  0x7f   :  { %771 = vmatpush2.bf16.msra.mxu0 %v2089_v39  ;;  %1137 = vmatprep.subr.bf16.mxu1 %v2121_v15  ;;  %v2150_v39 = vld [vmem:[%s3152_s2 + $0x4a0] ss:$8 sps:$4 sm:$0xff]  }
  0x80   :  { %1914 = vmatprep.subr.bf16.mxu0 %v2140_v29 }
  0x82   :  { %1138 = vmatpush2.bf16.msra.mxu1 %v2119_v16 }
  0x83   :  { %1139 = vmatprep.subr.bf16.mxu1 %v2124_v17 }
  0x86   :  { %1140 = vmatpush2.bf16.msra.mxu1 %v2122_v18 }
  0x87   :  { %1141 = vmatprep.subr.bf16.mxu1 %v2127_v19 }
  0x8a   :  { %1142 = vmatpush2.bf16.msra.mxu1 %v2125_v20 }
  0x8b   :  { %1143 = vmatprep.subr.bf16.mxu1 %v2130_v21 }
  0x8e   :  { %1144 = vmatpush2.bf16.msra.mxu1 %v2128_v22 }
  0x8f   :  { %1145 = vmatprep.subr.bf16.mxu1 %v2133_v23 }
  0x92   :  { %1146 = vmatpush2.bf16.msra.mxu1 %v2131_v24 }
  0x93   :  { %1147 = vmatprep.subr.bf16.mxu1 %v2136_v26 }
  0x96   :  { %1148 = vmatpush2.bf16.msra.mxu1 %v2134_v25 }
  0x97   :  { %1149 = vmatprep.subr.bf16.mxu1 %v2139_v27 }
  0x9a   :  { %1150 = vmatpush2.bf16.msra.mxu1 %v2137_v28 }
 0x102   :  { %v487_v47 = vpop.f32.mrf.mxu0 }
 0x103   :  { %v528_v48 = vpop.f32.mrf.mxu1  ;;  %v488_v49 = vadd.f32 %v487_v47, %v126_v45  ;;  %v573_v45 = vrot.slane %v1764_v43, %v2536_v42 }
 0x104   :  { %v489_v50 = vpop.f32.mrf.mxu0 }
 0x105   :  { %v530_v51 = vpop.f32.mrf.mxu1  ;;  %v490_v52 = vadd.f32 %v489_v50, %v130_v46  ;;  %v529_v53 = vadd.f32 %v528_v48, %v488_v49  ;;  %v2182_v46 = vmov 0.0   ;;  %v577_v48 = vrot.slane %v1764_v43, %v2542_v44 }
 0x106   :  { %v491_v54 = vpop.f32.mrf.mxu0  ;;  %v2683_v47 = vsel %vm789_vm0, 1.0, %v2182_v46 }
 0x107   :  { %v532_v55 = vpop.f32.mrf.mxu1  ;;  %v531_v56 = vadd.f32 %v530_v51, %v490_v52  ;;  %v535_v60 = vpack.c.bf16 %v529_v53, %v529_v53  ;;  %v2687_v51 = vsub.f32 1.0, %v2683_v47 }
 0x108   :  { %v492_v57 = vpop.f32.mrf.mxu0 }
 0x109   :  { %v533_v58 = vpop.f32.mrf.mxu1  ;;  %v536_v59 = vpack.c.bf16 %v531_v56, %v531_v56 }
 0x10b   :  { %772 = vmatprep.mubr.bf16.mxu0 %v536_v59 }
 0x10c   :  { %773 = vmatmul.mubr.bf16.vlgmr.msra.gmra.mxu0 %v535_v60 }
 0x10d   :  { %1915 = vmatpush3.bf16.msra.mxu0 %v2141_v30 }
 0x10e   :  { %1916 = vmatprep.subr.bf16.mxu0 %v2142_v31 }
 0x111   :  { %1917 = vmatpush3.bf16.msra.mxu0 %v2143_v32 }
 0x112   :  { %1918 = vmatprep.subr.bf16.mxu0 %v2144_v33 }
 0x115   :  { %1919 = vmatpush3.bf16.msra.mxu0 %v2145_v34 }
 0x116   :  { %1920 = vmatprep.subr.bf16.mxu0 %v2146_v35 }
 0x119   :  { %1921 = vmatpush3.bf16.msra.mxu0 %v2147_v36 }
 0x11a   :  { %1922 = vmatprep.subr.bf16.mxu0 %v2148_v37 }
 0x11d   :  { %1923 = vmatpush3.bf16.msra.mxu0 %v2149_v38 }
 0x11e   :  { %1924 = vmatprep.subr.bf16.mxu0 %v2150_v39 }
 0x121   :  { %1925 = vmatpush3.bf16.msra.mxu0 %v2151_v40 }
 0x1cc   :  { %v774_v49 = vpop.f32.mrf.mxu0 }
 0x1cd   :  { %v775_v50 = vadd.f32 %v774_v49, %v573_v45 }
 0x1ce   :  { %v776_v52 = vpop.f32.mrf.mxu0 }
 0x1cf   :  { %vm781_vm1 = vcmp.gt.f32.partialorder %v775_v50, 0.0  ;;  %v783_v53 = vmul.f32 0.01, %v775_v50  ;;  %v777_v54 = vadd.f32 %v776_v52, %v577_v48 }
 0x1d0   :  { %v778_v55 = vpop.f32.mrf.mxu0 }
 0x1d1   :  { %v785_v56 = vsel %vm781_vm1, %v775_v50, %v783_v53  ;;  %vm782_vm3 = vcmp.gt.f32.partialorder %v777_v54, 0.0  ;;  %v784_v41 = vmul.f32 0.01, %v777_v54 }
 0x1d2   :  { %v793_v57 = vmul.f32 %v2683_v47, %v785_v56  ;;  %v812_v58 = vmul.f32 %v2687_v51, %v785_v56  ;;  %v779_v59 = vpop.f32.mrf.mxu0 }
 0x1d3   :  { %v786_v60 = vsel %vm782_vm3, %v777_v54, %v784_v41 }
 0x1d4   :  { %v796_v61 = vsel %vm795_vm2, %v793_v57, 0.0  ;;  %v814_v62 = vsel %vm795_vm2, %v812_v58, 0.0  ;;  %v794_v63 = vmul.f32 %v2683_v47, %v786_v60  ;;  %v813_v0 = vmul.f32 %v2687_v51, %v786_v60 }
 0x1d5   :  { %v797_v1 = vrot.slane %v796_v61, 4  ;;  %v815_v2 = vrot.slane %v814_v62, 4 }
 0x1d6   :  { %v803_v3 = vsel %vm795_vm2, %v794_v63, 0.0  ;;  %v821_v4 = vsel %vm795_vm2, %v813_v0, 0.0 }
 0x1d7   :  { %v798_v5 = vadd.f32 %v797_v1, %v796_v61  ;;  %v816_v6 = vadd.f32 %v815_v2, %v814_v62  ;;  %v804_v7 = vrot.slane %v803_v3, 4  ;;  %v822_v8 = vrot.slane %v821_v4, 4 }
 0x1d9   :  { %v799_v9 = vrot.slane %v798_v5, 2  ;;  %v817_v10 = vrot.slane %v816_v6, 2  ;;  %v805_v11 = vadd.f32 %v804_v7, %v803_v3  ;;  %v823_v12 = vadd.f32 %v822_v8, %v821_v4 }
 0x1db   :  { %v800_v13 = vadd.f32 %v799_v9, %v798_v5  ;;  %v818_v14 = vadd.f32 %v817_v10, %v816_v6  ;;  %v806_v15 = vrot.slane %v805_v11, 2  ;;  %v824_v16 = vrot.slane %v823_v12, 2 }
 0x1dd   :  { %v801_v17 = vrot.slane %v800_v13, 1  ;;  %v819_v18 = vrot.slane %v818_v14, 1  ;;  %v807_v19 = vadd.f32 %v806_v15, %v805_v11  ;;  %v825_v20 = vadd.f32 %v824_v16, %v823_v12 }
 0x1df   :  { %v802_v21 = vadd.f32 %v801_v17, %v800_v13  ;;  %v820_v22 = vadd.f32 %v819_v18, %v818_v14  ;;  %v808_v23 = vrot.slane %v807_v19, 1  ;;  %v826_v24 = vrot.slane %v825_v20, 1 }
 0x1e1   :  { %v810_v25 = vmul.f32 0.5, %v802_v21  ;;  %v828_v26 = vmul.f32 0.5, %v820_v22  ;;  %v809_v27 = vadd.f32 %v808_v23, %v807_v19  ;;  %v827_v28 = vadd.f32 %v826_v24, %v825_v20 }
 0x1e3   :  { %v830_v29 = vmul.f32 %v2683_v47, %v810_v25  ;;  %v832_v30 = vmul.f32 %v828_v26, %v2687_v51  ;;  %v811_v31 = vmul.f32 0.5, %v809_v27  ;;  %v829_v32 = vmul.f32 0.5, %v827_v28  ;;  %v1765_v25 = vld [vmem:[%s3153_s3 + $0x2] ss:$8 sm:$0x3] }
 0x1e4   :  { %v1766_v26 = vld [vmem:[%s3153_s3 + $0x3] ss:$8 sm:$0x3]  ;;  %v892_v27 = vrot.slane %v1765_v25, %v2536_v42 }
 0x1e5   :  { %v834_v33 = vadd.f32 %v832_v30, %v830_v29  ;;  %v831_v34 = vmul.f32 %v2683_v47, %v811_v31  ;;  %v833_v35 = vmul.f32 %v829_v32, %v2687_v51  ;;  %v896_v30 = vrot.slane %v1765_v25, %v2542_v44 }
 0x1e6   :  { %v905_v32 = vrot.slane %v1766_v26, %v2536_v42 }
 0x1e7   :  { %v836_v36 = vsub.f32 %v785_v56, %v834_v33  ;;  %v835_v37 = vadd.f32 %v833_v35, %v831_v34  ;;  %v909_v34 = vrot.slane %v1766_v26, %v2542_v44 }
 0x1e9   :  { %v838_v38 = vmul.f32 %v836_v36, %v836_v36  ;;  %v837_v39 = vsub.f32 %v786_v60, %v835_v37 }
 0x1eb   :  { %v840_v40 = vmul.f32 %v2683_v47, %v838_v38  ;;  %v858_v43 = vmul.f32 %v838_v38, %v2687_v51  ;;  %v839_v45 = vmul.f32 %v837_v39, %v837_v39 }
 0x1ed   :  { %v842_v46 = vsel %vm795_vm2, %v840_v40, 0.0  ;;  %v860_v48 = vsel %vm795_vm2, %v858_v43, 0.0  ;;  %v841_v49 = vmul.f32 %v2683_v47, %v839_v45  ;;  %v859_v50 = vmul.f32 %v839_v45, %v2687_v51 }
 0x1ee   :  { %v843_v52 = vrot.slane %v842_v46, 4  ;;  %v861_v53 = vrot.slane %v860_v48, 4 }
 0x1ef   :  { %v849_v54 = vsel %vm795_vm2, %v841_v49, 0.0  ;;  %v867_v55 = vsel %vm795_vm2, %v859_v50, 0.0  ;;  %v1391_v49 = vld [vmem:[%s3154_s4] sm:$0xff]  ;;  %v1392_v50 = vld [vmem:[%s3154_s4 + $0x8] sm:$0xff] }
 0x1f0   :  { %v844_v56 = vadd.f32 %v843_v52, %v842_v46  ;;  %v862_v41 = vadd.f32 %v861_v53, %v860_v48  ;;  %v850_v57 = vrot.slane %v849_v54, 4  ;;  %v868_v58 = vrot.slane %v867_v55, 4  ;;  %v2153_v46 = vld [vmem:[%s3152_s2 + $0x410] ss:$8 sps:$4 sm:$0xff]   ;;  %v2155_v48 = vld [vmem:[%s3152_s2 + $0x400] ss:$8 sps:$4 sm:$0xff]  }
 0x1f1   :  { %v1455_v52 = vld [vmem:[%s3155_s5] sm:$0xff]  ;;  %v1456_v53 = vld [vmem:[%s3155_s5 + $0x8] sm:$0xff] }
 0x1f2   :  { %v845_v59 = vrot.slane %v844_v56, 2  ;;  %v863_v60 = vrot.slane %v862_v41, 2  ;;  %v851_v61 = vadd.f32 %v850_v57, %v849_v54  ;;  %v869_v62 = vadd.f32 %v868_v58, %v867_v55  ;;  %v1767_v55 = vld [vmem:[%s3153_s3 + $0x4] ss:$8 sm:$0x3] }
 0x1f3   :  { %v1519_v54 = vsub.f32 %v1391_v49, %v1455_v52  ;;  %v1520_v57 = vsub.f32 %v1392_v50, %v1456_v53  ;;  %v1466_v49 = vld [vmem:[%s3155_s5 + $0x58] sm:$0xff] }
 0x1f4   :  { %v846_v63 = vadd.f32 %v845_v59, %v844_v56  ;;  %v864_v0 = vadd.f32 %v863_v60, %v862_v41  ;;  %v852_v1 = vrot.slane %v851_v61, 2  ;;  %v870_v2 = vrot.slane %v869_v62, 2  ;;  %v1393_v56 = vld [vmem:[%s3154_s4 + $0x10] sm:$0xff]  ;;  %v1394_v60 = vld [vmem:[%s3154_s4 + $0x18] sm:$0xff] }
 0x1f5   :  { %v1457_v41 = vld [vmem:[%s3155_s5 + $0x10] sm:$0xff]  ;;  %v1583_v59 = vand.u32 2147483647, %v1519_v54  ;;  %v1403_v54 = vld [vmem:[%s3154_s4 + $0x60] sm:$0xff] }
 0x1f6   :  { %v847_v3 = vrot.slane %v846_v63, 1  ;;  %v865_v4 = vrot.slane %v864_v0, 1  ;;  %v853_v5 = vadd.f32 %v852_v1, %v851_v61  ;;  %v871_v6 = vadd.f32 %v870_v2, %v869_v62  ;;  %v1458_v61 = vld [vmem:[%s3155_s5 + $0x18] sm:$0xff] }
 0x1f7   :  { %v1521_v58 = vsub.f32 %v1393_v56, %v1457_v41  ;;  %v1584_v62 = vand.u32 2147483647, %v1520_v57  ;;  %v956_v2 = vrot.slane %v1767_v55, %v2542_v44  ;;  %v1460_v44 = vld [vmem:[%s3155_s5 + $0x28] sm:$0xff] }
 0x1f8   :  { %v848_v7 = vadd.f32 %v847_v3, %v846_v63  ;;  %v866_v8 = vadd.f32 %v865_v4, %v864_v0  ;;  %v854_v9 = vrot.slane %v853_v5, 1  ;;  %v872_v10 = vrot.slane %v871_v6, 1  ;;  %v1395_v3 = vld [vmem:[%s3154_s4 + $0x20] sm:$0xff] }
 0x1f9   :  { %v952_v63 = vrot.slane %v1767_v55, %v2536_v42  ;;  %v1522_v0 = vsub.f32 %v1394_v60, %v1458_v61  ;;  %v1585_v1 = vand.u32 2147483647, %v1521_v58  ;;  %v1459_v4 = vld [vmem:[%s3155_s5 + $0x20] sm:$0xff]  ;;  %v1396_v42 = vld [vmem:[%s3154_s4 + $0x28] sm:$0xff] }
 0x1fa   :  { %v856_v11 = vmul.f32 0.5, %v848_v7  ;;  %v874_v12 = vmul.f32 0.5, %v866_v8  ;;  %v855_v13 = vadd.f32 %v854_v9, %v853_v5  ;;  %v873_v14 = vadd.f32 %v872_v10, %v871_v6  ;;  %v1467_v55 = vld [vmem:[%s3155_s5 + $0x60] sm:$0xff]  ;;  %v1404_v58 = vld [vmem:[%s3154_s4 + $0x68] sm:$0xff] }
 0x1fb   :  { %v1647_v5 = vadd.f32 %v1584_v62, %v1583_v59  ;;  %v1523_v7 = vsub.f32 %v1395_v3, %v1459_v4  ;;  %v1586_v8 = vand.u32 2147483647, %v1522_v0  ;;  %v1531_v41 = vsub.f32 %v1403_v54, %v1467_v55  ;;  %v1468_v59 = vld [vmem:[%s3155_s5 + $0x68] sm:$0xff]  ;;  %v1469_v0 = vld [vmem:[%s3155_s5 + $0x70] sm:$0xff]  ;;  %v1406_v4 = vld [vmem:[%s3154_s4 + $0x78] sm:$0xff] }
 0x1fc   :  { %v876_v15 = vmul.f32 %v2683_v47, %v856_v11  ;;  %v878_v16 = vmul.f32 %v874_v12, %v2687_v51  ;;  %v857_v17 = vmul.f32 0.5, %v855_v13  ;;  %v875_v18 = vmul.f32 0.5, %v873_v14 }
 0x1fd   :  { %v1648_v9 = vadd.f32 %v1647_v5, %v1585_v1  ;;  %v1524_v12 = vsub.f32 %v1396_v42, %v1460_v44  ;;  %v1587_v13 = vand.u32 2147483647, %v1523_v7  ;;  %v1532_v61 = vsub.f32 %v1404_v58, %v1468_v59  ;;  %v1470_v5 = vld [vmem:[%s3155_s5 + $0x78] sm:$0xff]  ;;  %v1407_v42 = vld [vmem:[%s3154_s4 + $0x80] sm:$0xff] }
 0x1fe   :  { %v880_v19 = vadd.f32 %v878_v16, %v876_v15  ;;  %v877_v20 = vmul.f32 %v2683_v47, %v857_v17  ;;  %v879_v21 = vmul.f32 %v875_v18, %v2687_v51  ;;  %v1397_v15 = vld [vmem:[%s3154_s4 + $0x30] sm:$0xff]  ;;  %v1595_v62 = vand.u32 2147483647, %v1531_v41  ;;  %v1471_v44 = vld [vmem:[%s3155_s5 + $0x80] sm:$0xff]  ;;  %v1416_v41 = vld [vmem:[%s3154_s4 + $0xc8] sm:$0xff] }
 0x1ff   :  { %v1461_v16 = vld [vmem:[%s3155_s5 + $0x30] sm:$0xff]  ;;  %v1649_v17 = vadd.f32 %v1648_v9, %v1586_v8  ;;  %v1596_v3 = vand.u32 2147483647, %v1532_v61  ;;  %v1534_v7 = vsub.f32 %v1406_v4, %v1470_v5 }
 0x200   :  { %v882_v22 = vadd.f32 1e-05, %v880_v19  ;;  %v881_v23 = vadd.f32 %v879_v21, %v877_v20  ;;  %v1525_v19 = vsub.f32 %v1397_v15, %v1461_v16  ;;  %v1588_v20 = vand.u32 2147483647, %v1524_v12  ;;  %v1408_v12 = vld [vmem:[%s3154_s4 + $0x88] sm:$0xff]  ;;  %v1417_v61 = vld [vmem:[%s3154_s4 + $0xd0] sm:$0xff] }
 0x202   :  { %2156 = vrsqrt.f32 %v882_v22  ;;  %v883_v24 = vadd.f32 1e-05, %v881_v23  ;;  %v1398_v22 = vld [vmem:[%s3154_s4 + $0x38] sm:$0xff] }
 0x203   :  { %v1462_v23 = vld [vmem:[%s3155_s5 + $0x38] sm:$0xff] }
 0x204   :  { %2158 = vrsqrt.f32 %v883_v24  ;;  %v1650_v24 = vadd.f32 %v1649_v17, %v1587_v13  ;;  %v1472_v13 = vld [vmem:[%s3155_s5 + $0x88] sm:$0xff]  ;;  %v1409_v17 = vld [vmem:[%s3154_s4 + $0x90] sm:$0xff] }
 0x205   :  { %v1536_v15 = vsub.f32 %v1408_v12, %v1472_v13 }
 0x20f   :  { %v2157_v28 = vpop.eup %2156 }
 0x210   :  { %v886_v29 = vmul.f32 %v2157_v28, %v836_v36  ;;  %v2152_v36 = vld [vmem:[%s3152_s2 + $0x490] ss:$8 sps:$4 sm:$0xff]   ;;  %v1589_v28 = vand.u32 2147483647, %v1525_v19 }
 0x211   :  { %v2159_v31 = vpop.eup %2158  ;;  %1926 = vmatprep.subr.bf16.mxu0 %v2152_v36 }
 0x212   :  { %v887_v33 = vmul.f32 %v2159_v31, %v837_v39  ;;  %v899_v35 = vmul.f32 %v892_v27, %v886_v29  ;;  %1927 = vmatpush3.bf16.msra.mxu0 %v2153_v46  ;;  %v2154_v39 = vld [vmem:[%s3152_s2 + $0x480] ss:$8 sps:$4 sm:$0xff]   ;;  %v1526_v27 = vsub.f32 %v1398_v22, %v1462_v23  ;;  %v1651_v31 = vadd.f32 %v1650_v24, %v1588_v20  ;;  %v1410_v22 = vld [vmem:[%s3154_s4 + $0x98] sm:$0xff] }
 0x213   :  { %1928 = vmatprep.subr.bf16.mxu0 %v2154_v39  ;;  %v1399_v29 = vld [vmem:[%s3154_s4 + $0x40] sm:$0xff]  ;;  %v1474_v23 = vld [vmem:[%s3155_s5 + $0x98] sm:$0xff] }
 0x214   :  { %v900_v37 = vmul.f32 %v896_v30, %v887_v33  ;;  %v912_v38 = vadd.f32 %v905_v32, %v899_v35  ;;  %v1463_v30 = vld [vmem:[%s3155_s5 + $0x40] sm:$0xff]  ;;  %v1590_v33 = vand.u32 2147483647, %v1526_v27  ;;  %v1464_v35 = vld [vmem:[%s3155_s5 + $0x48] sm:$0xff] }
 0x215   :  { %v1527_v32 = vsub.f32 %v1399_v29, %v1463_v30  ;;  %v1411_v27 = vld [vmem:[%s3154_s4 + $0xa0] sm:$0xff] }
 0x216   :  { %v913_v40 = vadd.f32 %v909_v34, %v900_v37  ;;  %v914_v45 = vpack.c.bf16 %v912_v38, %v912_v38  ;;  %1929 = vmatpush3.bf16.msra.mxu0 %v2155_v48  ;;  %v1400_v34 = vld [vmem:[%s3154_s4 + $0x48] sm:$0xff]  ;;  %v1652_v37 = vadd.f32 %v1651_v31, %v1589_v28  ;;  %v1402_v48 = vld [vmem:[%s3154_s4 + $0x58] sm:$0xff]  ;;  %v1475_v28 = vld [vmem:[%s3155_s5 + $0xa0] sm:$0xff] }
 0x217   :  { %v1528_v38 = vsub.f32 %v1400_v34, %v1464_v35  ;;  %v1530_v52 = vsub.f32 %v1402_v48, %v1466_v49  ;;  %v1539_v30 = vsub.f32 %v1411_v27, %v1475_v28 }
 0x218   :  { %v915_v43 = vpack.c.bf16 %v913_v40, %v913_v40  ;;  %v1591_v40 = vand.u32 2147483647, %v1527_v32  ;;  %v1653_v36 = vadd.f32 %v1652_v37, %v1590_v33  ;;  %v1412_v32 = vld [vmem:[%s3154_s4 + $0xa8] sm:$0xff] }
 0x219   :  { %v1592_v39 = vand.u32 2147483647, %v1528_v38  ;;  %v1594_v57 = vand.u32 2147483647, %v1530_v52  ;;  %v1476_v33 = vld [vmem:[%s3155_s5 + $0xa8] sm:$0xff]  ;;  %v1413_v38 = vld [vmem:[%s3154_s4 + $0xb0] sm:$0xff] }
 0x21a   :  { %1151 = vmatprep.mubr.bf16.mxu1 %v915_v43  ;;  %v1401_v43 = vld [vmem:[%s3154_s4 + $0x50] sm:$0xff]  ;;  %v1654_v50 = vadd.f32 %v1653_v36, %v1591_v40  ;;  %v1540_v35 = vsub.f32 %v1412_v32, %v1476_v33  ;;  %v1603_v37 = vand.u32 2147483647, %v1539_v30  ;;  %v1415_v52 = vld [vmem:[%s3154_s4 + $0xc0] sm:$0xff]  ;;  %v1424_v30 = vld [vmem:[%s3154_s4 + $0x108] sm:$0xff] }
 0x21b   :  { %1152 = vmatmul.mubr.bf16.vlgmr.msra.gmra.mxu1 %v914_v45  ;;  %v1465_v45 = vld [vmem:[%s3155_s5 + $0x50] sm:$0xff] }
 0x21c   :  { %v1529_v46 = vsub.f32 %v1401_v43, %v1465_v45  ;;  %v1655_v56 = vadd.f32 %v1654_v50, %v1592_v39  ;;  %v1477_v40 = vld [vmem:[%s3155_s5 + $0xb0] sm:$0xff]  ;;  %v1604_v36 = vand.u32 2147483647, %v1540_v35  ;;  %v1478_v39 = vld [vmem:[%s3155_s5 + $0xb8] sm:$0xff] }
 0x21d   :  { %v1541_v45 = vsub.f32 %v1413_v38, %v1477_v40  ;;  %v1425_v35 = vld [vmem:[%s3154_s4 + $0x110] sm:$0xff] }
 0x21e   :  { %v1593_v53 = vand.u32 2147483647, %v1529_v46  ;;  %v1414_v46 = vld [vmem:[%s3154_s4 + $0xb8] sm:$0xff] }
 0x21f   :  { %v1542_v49 = vsub.f32 %v1414_v46, %v1478_v39  ;;  %v1605_v50 = vand.u32 2147483647, %v1541_v45  ;;  %v1426_v45 = vld [vmem:[%s3154_s4 + $0x118] sm:$0xff] }
 0x220   :  { %v1656_v60 = vadd.f32 %v1655_v56, %v1593_v53  ;;  %v1479_v53 = vld [vmem:[%s3155_s5 + $0xc0] sm:$0xff] }
 0x221   :  { %v1543_v55 = vsub.f32 %v1415_v52, %v1479_v53  ;;  %v1606_v56 = vand.u32 2147483647, %v1542_v49  ;;  %v1427_v49 = vld [vmem:[%s3154_s4 + $0x120] sm:$0xff] }
 0x222   :  { %v1657_v1 = vadd.f32 %v1656_v60, %v1594_v57  ;;  %v1480_v57 = vld [vmem:[%s3155_s5 + $0xc8] sm:$0xff] }
 0x223   :  { %v1544_v59 = vsub.f32 %v1416_v41, %v1480_v57  ;;  %v1607_v60 = vand.u32 2147483647, %v1543_v55  ;;  %v1428_v55 = vld [vmem:[%s3154_s4 + $0x128] sm:$0xff] }
 0x2db   :  { %v1153_v6 = vpop.f32.mrf.mxu1 }
 0x2dc   :  { %v1154_v10 = vadd.f32 %v1153_v6, %v952_v63  ;;  %v1405_v63 = vld [vmem:[%s3154_s4 + $0x70] sm:$0xff]  ;;  %v1658_v6 = vadd.f32 %v1657_v1, %v1595_v62  ;;  %v1608_v1 = vand.u32 2147483647, %v1544_v59 }
 0x2dd   :  { %v1155_v11 = vpop.f32.mrf.mxu1  ;;  %v1481_v62 = vld [vmem:[%s3155_s5 + $0xd0] sm:$0xff] }
 0x2de   :  { %v1156_v14 = vadd.f32 %v1155_v11, %v956_v2  ;;  %v1160_v25 = vpack.c.bf16 %v1154_v10, %v1154_v10  ;;  %v1533_v2 = vsub.f32 %v1405_v63, %v1469_v0  ;;  %v1659_v9 = vadd.f32 %v1658_v6, %v1596_v3  ;;  %v1482_v3 = vld [vmem:[%s3155_s5 + $0xd8] sm:$0xff]  ;;  %v1429_v59 = vld [vmem:[%s3154_s4 + $0x130] sm:$0xff] }
 0x2df   :  { %v1157_v18 = vpop.f32.mrf.mxu1  ;;  %v1535_v10 = vsub.f32 %v1407_v42, %v1471_v44  ;;  %v1598_v11 = vand.u32 2147483647, %v1534_v7  ;;  %v1545_v0 = vsub.f32 %v1417_v61, %v1481_v62  ;;  %v1419_v7 = vld [vmem:[%s3154_s4 + $0xe0] sm:$0xff] }
 0x2e0   :  { %v1161_v21 = vpack.c.bf16 %v1156_v14, %v1156_v14  ;;  %v1597_v8 = vand.u32 2147483647, %v1533_v2  ;;  %v1473_v18 = vld [vmem:[%s3155_s5 + $0x90] sm:$0xff]  ;;  %v1418_v2 = vld [vmem:[%s3154_s4 + $0xd8] sm:$0xff] }
 0x2e1   :  { %v1158_v26 = vpop.f32.mrf.mxu1  ;;  %v1599_v16 = vand.u32 2147483647, %v1535_v10  ;;  %v1537_v20 = vsub.f32 %v1409_v17, %v1473_v18  ;;  %v1546_v5 = vsub.f32 %v1418_v2, %v1482_v3  ;;  %v1609_v6 = vand.u32 2147483647, %v1545_v0  ;;  %v1420_v10 = vld [vmem:[%s3154_s4 + $0xe8] sm:$0xff]  ;;  %v1430_v0 = vld [vmem:[%s3154_s4 + $0x138] sm:$0xff] }
 0x2e2   :  { %1322 = vmatprep.mubr.bf16.mxu0 %v1161_v21  ;;  %v1660_v14 = vadd.f32 %v1659_v9, %v1597_v8  ;;  %v1600_v21 = vand.u32 2147483647, %v1536_v15  ;;  %v1483_v8 = vld [vmem:[%s3155_s5 + $0xe0] sm:$0xff]  ;;  %v1421_v15 = vld [vmem:[%s3154_s4 + $0xf0] sm:$0xff] }
 0x2e3   :  { %1323 = vmatmul.mubr.bf16.vlgmr.msra.gmra.mxu0 %v1160_v25  ;;  %v1538_v25 = vsub.f32 %v1410_v22, %v1474_v23  ;;  %v1601_v26 = vand.u32 2147483647, %v1537_v20  ;;  %v1547_v44 = vsub.f32 %v1419_v7, %v1483_v8  ;;  %v1610_v9 = vand.u32 2147483647, %v1546_v5  ;;  %v1422_v20 = vld [vmem:[%s3154_s4 + $0xf8] sm:$0xff]  ;;  %v1431_v5 = vld [vmem:[%s3154_s4 + $0x140] sm:$0xff] }
 0x2e4   :  { %v1661_v19 = vadd.f32 %v1660_v14, %v1598_v11  ;;  %v1484_v11 = vld [vmem:[%s3155_s5 + $0xe8] sm:$0xff] }
 0x2e5   :  { %v1602_v31 = vand.u32 2147483647, %v1538_v25  ;;  %v1548_v13 = vsub.f32 %v1420_v10, %v1484_v11  ;;  %v1611_v14 = vand.u32 2147483647, %v1547_v44  ;;  %v1423_v25 = vld [vmem:[%s3154_s4 + $0x100] sm:$0xff]  ;;  %v1432_v44 = vld [vmem:[%s3154_s4 + $0x148] sm:$0xff] }
 0x2e6   :  { %v1662_v24 = vadd.f32 %v1661_v19, %v1599_v16  ;;  %v1485_v16 = vld [vmem:[%s3155_s5 + $0xf0] sm:$0xff] }
 0x2e7   :  { %v1549_v18 = vsub.f32 %v1421_v15, %v1485_v16  ;;  %v1612_v19 = vand.u32 2147483647, %v1548_v13  ;;  %v1433_v13 = vld [vmem:[%s3154_s4 + $0x150] sm:$0xff] }
 0x2e8   :  { %v1663_v29 = vadd.f32 %v1662_v24, %v1600_v21  ;;  %v1486_v21 = vld [vmem:[%s3155_s5 + $0xf8] sm:$0xff] }
 0x2e9   :  { %v1550_v23 = vsub.f32 %v1422_v20, %v1486_v21  ;;  %v1613_v24 = vand.u32 2147483647, %v1549_v18  ;;  %v1434_v18 = vld [vmem:[%s3154_s4 + $0x158] sm:$0xff] }
 0x2ea   :  { %v1664_v34 = vadd.f32 %v1663_v29, %v1601_v26  ;;  %v1487_v26 = vld [vmem:[%s3155_s5 + $0x100] sm:$0xff] }
 0x2eb   :  { %v1551_v28 = vsub.f32 %v1423_v25, %v1487_v26  ;;  %v1614_v29 = vand.u32 2147483647, %v1550_v23  ;;  %v1435_v23 = vld [vmem:[%s3154_s4 + $0x160] sm:$0xff] }
 0x2ec   :  { %v1665_v43 = vadd.f32 %v1664_v34, %v1602_v31  ;;  %v1488_v31 = vld [vmem:[%s3155_s5 + $0x108] sm:$0xff] }
 0x2ed   :  { %v1552_v33 = vsub.f32 %v1424_v30, %v1488_v31  ;;  %v1615_v34 = vand.u32 2147483647, %v1551_v28  ;;  %v1436_v28 = vld [vmem:[%s3154_s4 + $0x168] sm:$0xff] }
 0x2ee   :  { %v1666_v48 = vadd.f32 %v1665_v43, %v1603_v37  ;;  %v1489_v37 = vld [vmem:[%s3155_s5 + $0x110] sm:$0xff] }
 0x2ef   :  { %v1553_v40 = vsub.f32 %v1425_v35, %v1489_v37  ;;  %v1616_v43 = vand.u32 2147483647, %v1552_v33  ;;  %v1437_v33 = vld [vmem:[%s3154_s4 + $0x170] sm:$0xff] }
 0x2f0   :  { %v1667_v54 = vadd.f32 %v1666_v48, %v1604_v36  ;;  %v1490_v36 = vld [vmem:[%s3155_s5 + $0x118] sm:$0xff] }
 0x2f1   :  { %v1554_v39 = vsub.f32 %v1426_v45, %v1490_v36  ;;  %v1617_v48 = vand.u32 2147483647, %v1553_v40  ;;  %v1438_v40 = vld [vmem:[%s3154_s4 + $0x178] sm:$0xff] }
 0x2f2   :  { %v1668_v58 = vadd.f32 %v1667_v54, %v1605_v50  ;;  %v1491_v50 = vld [vmem:[%s3155_s5 + $0x120] sm:$0xff] }
 0x2f3   :  { %v1555_v53 = vsub.f32 %v1427_v49, %v1491_v50  ;;  %v1618_v54 = vand.u32 2147483647, %v1554_v39  ;;  %v1439_v39 = vld [vmem:[%s3154_s4 + $0x180] sm:$0xff] }
 0x2f4   :  { %v1669_v63 = vadd.f32 %v1668_v58, %v1606_v56  ;;  %v1492_v56 = vld [vmem:[%s3155_s5 + $0x128] sm:$0xff] }
 0x2f5   :  { %v1556_v57 = vsub.f32 %v1428_v55, %v1492_v56  ;;  %v1619_v58 = vand.u32 2147483647, %v1555_v53  ;;  %v1440_v53 = vld [vmem:[%s3154_s4 + $0x188] sm:$0xff] }
 0x2f6   :  { %v1670_v4 = vadd.f32 %v1669_v63, %v1607_v60  ;;  %v1493_v60 = vld [vmem:[%s3155_s5 + $0x130] sm:$0xff] }
 0x2f7   :  { %v1557_v62 = vsub.f32 %v1429_v59, %v1493_v60  ;;  %v1620_v63 = vand.u32 2147483647, %v1556_v57  ;;  %v1441_v57 = vld [vmem:[%s3154_s4 + $0x190] sm:$0xff] }
 0x2f8   :  { %v1671_v42 = vadd.f32 %v1670_v4, %v1608_v1  ;;  %v1494_v1 = vld [vmem:[%s3155_s5 + $0x138] sm:$0xff] }
 0x2f9   :  { %v1558_v3 = vsub.f32 %v1430_v0, %v1494_v1  ;;  %v1621_v4 = vand.u32 2147483647, %v1557_v62  ;;  %v1442_v62 = vld [vmem:[%s3154_s4 + $0x198] sm:$0xff] }
 0x2fa   :  { %v1672_v12 = vadd.f32 %v1671_v42, %v1609_v6  ;;  %v1495_v6 = vld [vmem:[%s3155_s5 + $0x140] sm:$0xff] }
 0x2fb   :  { %v1559_v8 = vsub.f32 %v1431_v5, %v1495_v6  ;;  %v1622_v42 = vand.u32 2147483647, %v1558_v3  ;;  %v1443_v3 = vld [vmem:[%s3154_s4 + $0x1a0] sm:$0xff] }
 0x2fc   :  { %v1673_v17 = vadd.f32 %v1672_v12, %v1610_v9  ;;  %v1496_v9 = vld [vmem:[%s3155_s5 + $0x148] sm:$0xff] }
 0x2fd   :  { %v1560_v11 = vsub.f32 %v1432_v44, %v1496_v9  ;;  %v1623_v12 = vand.u32 2147483647, %v1559_v8  ;;  %v1444_v8 = vld [vmem:[%s3154_s4 + $0x1a8] sm:$0xff] }
 0x2fe   :  { %v1674_v22 = vadd.f32 %v1673_v17, %v1611_v14  ;;  %v1497_v14 = vld [vmem:[%s3155_s5 + $0x150] sm:$0xff] }
 0x2ff   :  { %v1561_v16 = vsub.f32 %v1433_v13, %v1497_v14  ;;  %v1624_v17 = vand.u32 2147483647, %v1560_v11  ;;  %v1445_v11 = vld [vmem:[%s3154_s4 + $0x1b0] sm:$0xff] }
 0x300   :  { %v1675_v27 = vadd.f32 %v1674_v22, %v1612_v19  ;;  %v1498_v19 = vld [vmem:[%s3155_s5 + $0x158] sm:$0xff] }
 0x301   :  { %v1562_v21 = vsub.f32 %v1434_v18, %v1498_v19  ;;  %v1625_v22 = vand.u32 2147483647, %v1561_v16  ;;  %v1446_v16 = vld [vmem:[%s3154_s4 + $0x1b8] sm:$0xff] }
 0x302   :  { %v1676_v32 = vadd.f32 %v1675_v27, %v1613_v24  ;;  %v1499_v24 = vld [vmem:[%s3155_s5 + $0x160] sm:$0xff] }
 0x303   :  { %v1563_v26 = vsub.f32 %v1435_v23, %v1499_v24  ;;  %v1626_v27 = vand.u32 2147483647, %v1562_v21  ;;  %v1447_v21 = vld [vmem:[%s3154_s4 + $0x1c0] sm:$0xff] }
 0x304   :  { %v1677_v38 = vadd.f32 %v1676_v32, %v1614_v29  ;;  %v1500_v29 = vld [vmem:[%s3155_s5 + $0x168] sm:$0xff] }
 0x305   :  { %v1564_v31 = vsub.f32 %v1436_v28, %v1500_v29  ;;  %v1627_v32 = vand.u32 2147483647, %v1563_v26  ;;  %v1448_v26 = vld [vmem:[%s3154_s4 + $0x1c8] sm:$0xff] }
 0x306   :  { %v1678_v46 = vadd.f32 %v1677_v38, %v1615_v34  ;;  %v1501_v34 = vld [vmem:[%s3155_s5 + $0x170] sm:$0xff] }
 0x307   :  { %v1565_v37 = vsub.f32 %v1437_v33, %v1501_v34  ;;  %v1628_v38 = vand.u32 2147483647, %v1564_v31  ;;  %v1449_v31 = vld [vmem:[%s3154_s4 + $0x1d0] sm:$0xff] }
 0x308   :  { %v1679_v52 = vadd.f32 %v1678_v46, %v1616_v43  ;;  %v1502_v43 = vld [vmem:[%s3155_s5 + $0x178] sm:$0xff] }
 0x309   :  { %v1566_v36 = vsub.f32 %v1438_v40, %v1502_v43  ;;  %v1629_v46 = vand.u32 2147483647, %v1565_v37  ;;  %v1450_v37 = vld [vmem:[%s3154_s4 + $0x1d8] sm:$0xff] }
 0x30a   :  { %v1680_v41 = vadd.f32 %v1679_v52, %v1617_v48  ;;  %v1503_v48 = vld [vmem:[%s3155_s5 + $0x180] sm:$0xff] }
 0x30b   :  { %v1567_v50 = vsub.f32 %v1439_v39, %v1503_v48  ;;  %v1630_v52 = vand.u32 2147483647, %v1566_v36  ;;  %v1451_v36 = vld [vmem:[%s3154_s4 + $0x1e0] sm:$0xff]  ;;  %v1453_v39 = vld [vmem:[%s3154_s4 + $0x1f0] sm:$0xff] }
 0x30c   :  { %v1681_v61 = vadd.f32 %v1680_v41, %v1618_v54  ;;  %v1504_v54 = vld [vmem:[%s3155_s5 + $0x188] sm:$0xff] }
 0x30d   :  { %v1568_v56 = vsub.f32 %v1440_v53, %v1504_v54  ;;  %v1631_v41 = vand.u32 2147483647, %v1567_v50  ;;  %v1515_v50 = vld [vmem:[%s3155_s5 + $0x1e0] sm:$0xff]  ;;  %v1517_v54 = vld [vmem:[%s3155_s5 + $0x1f0] sm:$0xff] }
 0x30e   :  { %v1682_v2 = vadd.f32 %v1681_v61, %v1619_v58  ;;  %v1505_v58 = vld [vmem:[%s3155_s5 + $0x190] sm:$0xff] }
 0x30f   :  { %v1569_v60 = vsub.f32 %v1441_v57, %v1505_v58  ;;  %v1632_v61 = vand.u32 2147483647, %v1568_v56  ;;  %v1579_v56 = vsub.f32 %v1451_v36, %v1515_v50  ;;  %v1581_v58 = vsub.f32 %v1453_v39, %v1517_v54 }
 0x310   :  { %v1683_v7 = vadd.f32 %v1682_v2, %v1620_v63  ;;  %v1506_v63 = vld [vmem:[%s3155_s5 + $0x198] sm:$0xff] }
 0x311   :  { %v1570_v1 = vsub.f32 %v1442_v62, %v1506_v63  ;;  %v1633_v2 = vand.u32 2147483647, %v1569_v60  ;;  %v1725_v60 = vld [vmem:[%s3156_s6] sm:$0xf]  ;;  %v1643_v62 = vand.u32 2147483647, %v1579_v56 }
 0x312   :  { %v1684_v10 = vadd.f32 %v1683_v7, %v1621_v4  ;;  %v1507_v4 = vld [vmem:[%s3155_s5 + $0x1a0] sm:$0xff] }
 0x313   :  { %v1571_v6 = vsub.f32 %v1443_v3, %v1507_v4  ;;  %v1634_v7 = vand.u32 2147483647, %v1570_v1 }
 0x314   :  { %v1685_v15 = vadd.f32 %v1684_v10, %v1622_v42  ;;  %v1508_v42 = vld [vmem:[%s3155_s5 + $0x1a8] sm:$0xff] }
 0x315   :  { %v1572_v9 = vsub.f32 %v1444_v8, %v1508_v42  ;;  %v1635_v10 = vand.u32 2147483647, %v1571_v6 }
 0x316   :  { %v1686_v20 = vadd.f32 %v1685_v15, %v1623_v12  ;;  %v1509_v12 = vld [vmem:[%s3155_s5 + $0x1b0] sm:$0xff] }
 0x317   :  { %v1573_v14 = vsub.f32 %v1445_v11, %v1509_v12  ;;  %v1636_v15 = vand.u32 2147483647, %v1572_v9  ;;  %v45_v11 = vld [vmem:[%s3153_s3 + $0x5] ss:$0 sm:$0xff] }
 0x318   :  { %v1687_v25 = vadd.f32 %v1686_v20, %v1624_v17  ;;  %v1510_v17 = vld [vmem:[%s3155_s5 + $0x1b8] sm:$0xff] }
 0x319   :  { %v1574_v19 = vsub.f32 %v1446_v16, %v1510_v17  ;;  %v1637_v20 = vand.u32 2147483647, %v1573_v14 }
 0x31a   :  { %v1688_v30 = vadd.f32 %v1687_v25, %v1625_v22  ;;  %v1511_v22 = vld [vmem:[%s3155_s5 + $0x1c0] sm:$0xff] }
 0x31b   :  { %v1575_v24 = vsub.f32 %v1447_v21, %v1511_v22  ;;  %v1638_v25 = vand.u32 2147483647, %v1574_v19 }
 0x31c   :  { %v1689_v35 = vadd.f32 %v1688_v30, %v1626_v27  ;;  %v1512_v27 = vld [vmem:[%s3155_s5 + $0x1c8] sm:$0xff] }
 0x31d   :  { %v1576_v29 = vsub.f32 %v1448_v26, %v1512_v27  ;;  %v1639_v30 = vand.u32 2147483647, %v1575_v24 }
 0x31e   :  { %v1690_v45 = vadd.f32 %v1689_v35, %v1627_v32  ;;  %v1513_v32 = vld [vmem:[%s3155_s5 + $0x1d0] sm:$0xff] }
 0x31f   :  { %v1577_v34 = vsub.f32 %v1449_v31, %v1513_v32  ;;  %v1640_v35 = vand.u32 2147483647, %v1576_v29 }
 0x320   :  { %v1691_v49 = vadd.f32 %v1690_v45, %v1628_v38  ;;  %v1514_v38 = vld [vmem:[%s3155_s5 + $0x1d8] sm:$0xff] }
 0x321   :  { %v1578_v43 = vsub.f32 %v1450_v37, %v1514_v38  ;;  %v1641_v45 = vand.u32 2147483647, %v1577_v34 }
 0x322   :  { %v1692_v55 = vadd.f32 %v1691_v49, %v1629_v46  ;;  %v1452_v46 = vld [vmem:[%s3154_s4 + $0x1e8] sm:$0xff]  ;;  %v1454_v49 = vld [vmem:[%s3154_s4 + $0x1f8] sm:$0xff] }
 0x323   :  { %v1642_v53 = vand.u32 2147483647, %v1578_v43 }
 0x324   :  { %v1693_v59 = vadd.f32 %v1692_v55, %v1630_v52  ;;  %v1516_v52 = vld [vmem:[%s3155_s5 + $0x1e8] sm:$0xff]  ;;  %v1518_v55 = vld [vmem:[%s3155_s5 + $0x1f8] sm:$0xff] }
 0x326   :  { %v1694_v0 = vadd.f32 %v1693_v59, %v1631_v41  ;;  %v1580_v41 = vsub.f32 %v1452_v46, %v1516_v52  ;;  %v1582_v59 = vsub.f32 %v1454_v49, %v1518_v55 }
 0x328   :  { %v1695_v5 = vadd.f32 %v1694_v0, %v1632_v61  ;;  %v1726_v61 = vld [vmem:[%s3157_s7] sm:$0xf]  ;;  %v1644_v63 = vand.u32 2147483647, %v1580_v41 }
 0x329   :  { %v1727_v1 = vsub.f32 %v1725_v60, %v1726_v61 }
 0x32a   :  { %v1696_v44 = vadd.f32 %v1695_v5, %v1633_v2  ;;  %v1645_v2 = vand.u32 2147483647, %v1581_v58  ;;  %v1646_v5 = vand.u32 2147483647, %v1582_v59 }
 0x32b   :  { %v1728_v4 = vand.u32 2147483647, %v1727_v1 }
 0x32c   :  { %v1697_v13 = vadd.f32 %v1696_v44, %v1634_v7  ;;  %v1724_v7 = vld [vmem:[%s3158_s8] sm:$0xf] }
 0x32d   :  { %v1729_v42 = vmul.f32 %v1728_v4, %v1724_v7 }
 0x32e   :  { %v1698_v18 = vadd.f32 %v1697_v13, %v1635_v10 }
 0x32f   :  { %v1730_v9 = vsel %vm795_vm2, %v1729_v42, 0.0 }
 0x330   :  { %v1699_v23 = vadd.f32 %v1698_v18, %v1636_v15 }
 0x332   :  { %v1700_v28 = vadd.f32 %v1699_v23, %v1637_v20 }
 0x334   :  { %v1701_v33 = vadd.f32 %v1700_v28, %v1638_v25  ;;  %v1337_v28 = vld [vmem:[%s3151_s1] sm:$0xf] }
 0x335   :  { %v1358_v34 = vsub.f32 1.0, %v1337_v28 }
 0x336   :  { %v1702_v40 = vadd.f32 %v1701_v33, %v1639_v30 }
 0x338   :  { %v1703_v48 = vadd.f32 %v1702_v40, %v1640_v35 }
 0x33a   :  { %v1704_v57 = vadd.f32 %v1703_v48, %v1641_v45 }
 0x33c   :  { %v1705_v0 = vadd.f32 %v1704_v57, %v1642_v53 }
 0x33e   :  { %v1706_v3 = vadd.f32 %v1705_v0, %v1643_v62 }
 0x340   :  { %v1707_v6 = vadd.f32 %v1706_v3, %v1644_v63 }
 0x342   :  { %v1708_v8 = vadd.f32 %v1707_v6, %v1645_v2 }
 0x344   :  { %v1709_v44 = vadd.f32 %v1708_v8, %v1646_v5 }
 0x346   :  { %1710 = vadd.xlane.f32.xlu1 %v1709_v44 }
 0x34a   :  { %1731 = vadd.xlane.f32.xlu1 %v1730_v9 }
 0x3a3   :  { %v1930_v10 = vpop.f32.mrf.mxu0 }
 0x3a5   :  { %v1931_v12 = vpop.f32.mrf.mxu0 }
 0x3a6   :  { %v1932_v13 = vadd.f32 %v1931_v12, %v1930_v10 }
 0x3a7   :  { %v1933_v14 = vpop.f32.mrf.mxu0 }
 0x3a8   :  { %v1325_v15 = vadd.f32 %v1932_v13, %v45_v11 }
 0x3a9   :  { %v1934_v16 = vpop.f32.mrf.mxu0 }
 0x3aa   :  { %v1913_v17 = vmul.f32 -1.442695, %v1325_v15  ;;  %v1338_v18 = vand.u32 2147483647, %v1325_v15  ;;  %v1348_v26 = vsub.f32 0.0, %v1325_v15  ;;  %v1345_v29 = vmin.f32 %v1325_v15, 0.0 }
 0x3ac   :  { %2160 = vpow2.f32 %v1913_v17  ;;  %v1339_v19 = vsub.f32 0.0, %v1338_v18  ;;  %v1349_v31 = vmin.f32 %v1348_v26, 0.0 }
 0x3ae   :  { %v1340_v20 = vmul.f32 1.442695, %v1339_v19 }
 0x3b0   :  { %2162 = vpow2.f32 %v1340_v20 }
 0x3b9   :  { %v2161_v21 = vpop.eup %2160 }
 0x3ba   :  { %v1333_v22 = vadd.f32 1.0, %v2161_v21 }
 0x3bc   :  { %2164 = vrcp.f32 %v1333_v22 }
 0x3bd   :  { %v2163_v23 = vpop.eup %2162 }
 0x3be   :  { %v1342_v24 = vadd.f32 1.0, %v2163_v23 }
 0x3c0   :  { %2166 = vlog2.f32 %v1342_v24 }
 0x3c9   :  { %v2165_v25 = vpop.eup %2164 }
 0x3ca   :  { %1336 = vst [vmem:[%s3159_s9] sm:$0xf] %v2165_v25 }
 0x3cd   :  { %v2167_v27 = vpop.eup %2166 }
 0x3ce   :  { %v1344_v30 = vmul.f32 0.6931472, %v2167_v27 }
 0x3cf   :  { %v1711_v49 = vpop.xlane.xlu1 %1710 }
 0x3d0   :  { %v1346_v32 = vsub.f32 %v1345_v29, %v1344_v30  ;;  %v1350_v33 = vsub.f32 %v1349_v31, %v1344_v30  ;;  %v1712_v52 = vrot.slane %v1711_v49, 4 }
 0x3d2   :  { %v1347_v35 = vmax.f32 %v1346_v32, -100.0  ;;  %v1351_v37 = vmax.f32 %v1350_v33, -100.0  ;;  %v1713_v54 = vadd.f32 %v1712_v52, %v1711_v49 }
 0x3d3   :  { %v1732_v50 = vpop.xlane.xlu1 %1731 }
 0x3d4   :  { %v1357_v38 = vmul.f32 %v1347_v35, %v1337_v28  ;;  %v1359_v40 = vmul.f32 %v1358_v34, %v1351_v37  ;;  %v1733_v53 = vrot.slane %v1732_v50, 4  ;;  %v1714_v58 = vrot.slane %v1713_v54, 2 }
 0x3d6   :  { %v1360_v43 = vadd.f32 %v1359_v40, %v1357_v38  ;;  %v1734_v56 = vadd.f32 %v1733_v53, %v1732_v50  ;;  %v1715_v63 = vadd.f32 %v1714_v58, %v1713_v54 }
 0x3d8   :  { %v1361_v45 = vsub.f32 0.0, %v1360_v43  ;;  %v1716_v5 = vrot.slane %v1715_v63, 1 }
 0x3da   :  { %v1363_v36 = vmul.f32 %v2683_v47, %v1361_v45  ;;  %v1377_v39 = vmul.f32 %v1361_v45, %v2687_v51  ;;  %v1735_v47 = vrot.slane %v1734_v56, 2  ;;  %v1717_v42 = vadd.f32 %v1716_v5, %v1715_v63 }
 0x3dc   :  { %v1364_v46 = vsel %vm795_vm2, %v1363_v36, 0.0  ;;  %v1378_v48 = vsel %vm795_vm2, %v1377_v39, 0.0  ;;  %v1736_v0 = vadd.f32 %v1735_v47, %v1734_v56 }
 0x3dd   :  { %1365 = vadd.xlane.f32.xlu0 %v1364_v46 }
 0x3de   :  { %v1737_v7 = vrot.slane %v1736_v0, 1 }
 0x3e0   :  { %v1738_v44 = vadd.f32 %v1737_v7, %v1736_v0 }
 0x3e1   :  { %1379 = vadd.xlane.f32.xlu0 %v1378_v48 }
 0x466   :  { %v1366_v55 = vpop.xlane.xlu0 %1365 }
 0x467   :  { %v1367_v41 = vrot.slane %v1366_v55, 4 }
 0x469   :  { %v1368_v57 = vadd.f32 %v1367_v41, %v1366_v55 }
 0x46a   :  { %v1380_v59 = vpop.xlane.xlu0 %1379 }
 0x46b   :  { %v1369_v60 = vrot.slane %v1368_v57, 2  ;;  %v1381_v61 = vrot.slane %v1380_v59, 4 }
 0x46d   :  { %v1382_v62 = vadd.f32 %v1381_v61, %v1380_v59  ;;  %v1370_v51 = vadd.f32 %v1369_v60, %v1368_v57 }
 0x46f   :  { %v1383_v1 = vrot.slane %v1382_v62, 2  ;;  %v1371_v2 = vrot.slane %v1370_v51, 1 }
 0x471   :  { %v1384_v3 = vadd.f32 %v1383_v1, %v1382_v62  ;;  %v1372_v4 = vadd.f32 %v1371_v2, %v1370_v51 }
 0x473   :  { %1936 = vpush %v1372_v4  ;;  %v1385_v6 = vrot.slane %v1384_v3, 1 }
 0x475   :  { %v1386_v8 = vadd.f32 %v1385_v6, %v1384_v3 }
 0x477   :  { %1938 = vpush %v1386_v8 }
 0x478   :  { %1940 = vpush %v1717_v42 }
 0x479   :  { %1942 = vpush %v1738_v44 }
 0x4a4   :  { %s1937_s1 = spop %1936 }
 0x4a5   :  { %s1374_s25 = smul.f32 0.00390625, %s1937_s1 }
 0x4a7   :  { %1376 = sst [smem:[#allocation2]] %s1374_s25 }
 0x4a8   :  { %s1939_s26 = spop %1938 }
 0x4a9   :  { %s1388_s27 = smul.f32 0.00390625, %s1939_s26  ;;  %s1941_s28 = spop %1940 }
 0x4aa   :  { %s1721_s29 = smul.f32 1.5258789e-05, %s1941_s28  ;;  %s1943_s30 = spop %1942 }
 0x4ab   :  { %1390 = sst [smem:[#allocation2 + $0x1]] %s1388_s27  ;;  %s1742_s2 = smul.f32 0.001953125, %s1943_s30 }
 0x4ac   :  { %1723 = sst [smem:[#allocation2 + $0x2]] %s1721_s29 }
 0x4ad   :  { %1744 = sst [smem:[#allocation2 + $0x3]] %s1742_s2 }
 0x4ae   :  { %2179 = shalt.err (!%p2176_p4)
}
 0x4af   :  { %s2183_s10 = smov [#allocation2]  }
 0x4b0   :  { %1756 = dma.smem_to_vmem %s2183_s10, 16, %s1754_s24, [#allocation3]  }
 0x4b1   :  { %2180 = dma.done.wait [#allocation3], 16  }
 0x4b2   :  { %2181 = vsyncadd [#allocation3], 4294967280 }
 0x4b3   :  { %1762 = sfence }
 0x4b4   :  { %1763 = vsyncpa [#allocation3], 1 }

</bundles_post_ra>
